<compile_context>
chip_gen: v7x
topology: tpu7x:2x2x1
jax: 0.10.0
libtpu: 0.0.40
codegen_flags: <defaults>
</compile_context>

<pallas_src>
import math
import numpy as np
import jax
import jax.numpy as jnp
from jax import lax
from jax.experimental import pallas as pl
from jax.experimental.pallas import tpu as pltpu


def _round_up(x, m):
    return ((x + m - 1) // m) * m


def _pick_vmem_limit():
    # Generation-aware VMEM budget: ~3/4 of physical, capped at 100 MiB.
    # (v5e/v6e: 128 MiB physical -> 96 MiB; v7x: 64 MiB physical -> 48 MiB.)
    try:
        cap = pltpu.get_tpu_info().vmem_capacity_bytes
    except Exception:
        cap = 64 * 1024 * 1024
    return int(min(cap * 3 // 4, 100 * 1024 * 1024))


# --------------------------------------------------------------------------
# The conv kernel: build im2col patch in VMEM from static ref-side slices,
# then a single fused bf16 MXU matmul with f32 accumulation.
# --------------------------------------------------------------------------
def _make_conv3d_kernel(offsets, cin_p, ts):
    def kernel(xc_ref, xn_ref, w_ref, b_ref, o_ref, patch_ref):
        # xc_ref   : (Cin_p, TS)       current spatial tile (bf16)
        # xn_ref   : (Cin_p, TS)       next spatial tile — halo source (bf16)
        # w_ref    : (Cout_p, T*Cin_p) lane-dense effective weights (bf16)
        # b_ref    : (Cout_p, 1)       bias (f32)
        # o_ref    : (Cout_p, TS)      lane-dense output tile (f32)
        # patch_ref: (T*Cin_p, TS)     im2col scratch (bf16), fully rewritten each step
        for t, off in enumerate(offsets):              # static unroll over taps
            r0, r1 = t * cin_p, (t + 1) * cin_p
            if off == 0:
                patch_ref[r0:r1, :] = xc_ref[...]
            elif off < ts:
                patch_ref[r0:r1, : ts - off] = xc_ref[:, off:]
                patch_ref[r0:r1, ts - off:] = xn_ref[:, :off]
            else:                                      # off == ts: tap entirely in halo tile
                patch_ref[r0:r1, :] = xn_ref[...]
        # One fat matmul: contraction depth T*Cin_p (>= 256 for 3x3x3 kernels),
        # bf16 operands, f32 accumulation on the MXU.
        acc = jnp.dot(w_ref[...], patch_ref[...],
                      preferred_element_type=jnp.float32)
        o_ref[...] = (acc + b_ref[...]).astype(o_ref.dtype)
    return kernel


# --------------------------------------------------------------------------
# Wrapper: layout conversion (plain-JAX glue) + pallas_call plumbing
# --------------------------------------------------------------------------
def conv3d_rf_forward(x_ncdhw, weight, lin_comb, bias):
    """x: (N,Cin,D,H,W) f32; weight: (Cout,Cin,K); lin_comb: (Cout,Cin,K,KD,KH,KW);
    bias: (Cout,). Returns (N,Cout,Do,Ho,Wo) f32 (stride=1, valid, groups=1)."""
    N, Cin, D, H, W = x_ncdhw.shape
    Cout, _, K = weight.shape
    KD, KH, KW = lin_comb.shape[3:]
    Do, Ho, Wo = D - KD + 1, H - KH + 1, W - KW + 1
    T = KD * KH * KW

    # Effective per-tap weights: tiny one-shot einsum — leave to XLA (no extra launch).
    weff = jnp.einsum('oik,oikdhw->oidhw', weight, lin_comb)   # (Cout, Cin, KD, KH, KW)

    # bf16 sublane packing -> pad channels to multiples of 16.
    Cin_p = _round_up(Cin, 16)
    Cout_p = _round_up(Cout, 16)
    Kp = T * Cin_p                                 # fused contraction depth

    # Flattened-spatial layout: outputs live on a (Do, H, W) grid (invalid h/w
    # positions cropped afterwards); each conv tap becomes a static lane offset.
    L = D * H * W
    LOUT = Do * H * W
    offsets = tuple(kd * H * W + kh * W + kw
                    for kd in range(KD) for kh in range(KH) for kw in range(KW))
    tail = offsets[-1]                             # max receptive-field reach (halo)

    # Spatial tile: lane-dense (multiple of 128) and >= halo, so a single neighbor
    # tile is enough halo for every tap.
    TS = max(_round_up(tail, 128), min(512, _round_up(LOUT, 128)))
    J = pl.cdiv(LOUT, TS)                          # spatial grid extent
    Lin_pad = (J + 1) * TS                         # +1 tile: halo BlockSpec never OOBs
                                                   # (L <= LOUT + tail <= (J+1)*TS)

    # Lane-dense weights (Cout_p, T*Cin_p): column t*Cin_p + c  <->  (tap t, in-chan c).
    w_m = jnp.zeros((Cout_p, T, Cin_p), jnp.float32)
    w_m = w_m.at[:Cout, :, :Cin].set(
        jnp.transpose(weff, (0, 2, 3, 4, 1)).reshape(Cout, T, Cin))
    w_m = w_m.reshape(Cout_p, Kp).astype(jnp.bfloat16)

    bias_p = jnp.zeros((Cout_p, 1), jnp.float32).at[:Cout, 0].set(bias)

    x_flat = jnp.zeros((N, Cin_p, Lin_pad), jnp.bfloat16)
    x_flat = x_flat.at[:, :Cin, :L].set(
        x_ncdhw.reshape(N, Cin, L).astype(jnp.bfloat16))

    y_flat = pl.pallas_call(
        _make_conv3d_kernel(offsets, Cin_p, TS),
        out_shape=jax.ShapeDtypeStruct((N, Cout_p, J * TS), jnp.float32),
        grid=(N, J),
        in_specs=[
            # current spatial tile
            pl.BlockSpec((pl.Squeezed(), Cin_p, TS), lambda n, j: (n, 0, j)),
            # next spatial tile (halo); same array passed a second time
            pl.BlockSpec((pl.Squeezed(), Cin_p, TS), lambda n, j: (n, 0, j + 1)),
            # grid-invariant lane-dense weights and bias
            pl.BlockSpec((Cout_p, Kp), lambda n, j: (0, 0)),
            pl.BlockSpec((Cout_p, 1), lambda n, j: (0, 0)),
        ],
        out_specs=pl.BlockSpec((pl.Squeezed(), Cout_p, TS), lambda n, j: (n, 0, j)),
        scratch_shapes=[pltpu.VMEM((Kp, TS), jnp.bfloat16)],   # im2col patch
        compiler_params=pltpu.CompilerParams(
            dimension_semantics=("parallel", "parallel"),
            vmem_limit_bytes=_pick_vmem_limit()),
    )(x_flat, x_flat, w_m, bias_p)

    # Crop padded out-channels, padded lanes, and invalid (h >= Ho, w >= Wo) positions.
    y = y_flat[:, :Cout, :LOUT].reshape(N, Cout, Do, H, W)[:, :, :, :Ho, :Wo]
    return y


# --------------------------------------------------------------------------
# Deterministic parameter construction (mirrors Conv3dRF.__init__)
# --------------------------------------------------------------------------
def build_conv3d_rf_params(in_channels, out_channels, num_kernels,
                           total_kernels, ksize, key):
    KD, KH, KW = ksize
    # synthetic fixed kernel bank (stands in for np.load(kernels_path))
    bank = np.random.default_rng(42).standard_normal(
        (total_kernels, KD, KH, KW)).astype(np.float32)

    # build_fixed_kernels: random subset of the bank per (out, in) channel
    # (random.sample replaced by a deterministic numpy RNG)
    rng = np.random.default_rng(0)
    lin_comb = np.zeros((out_channels, in_channels, num_kernels, KD, KH, KW),
                        dtype=np.float32)
    for o in range(out_channels):
        for i in range(in_channels):
            idx = rng.choice(total_kernels, size=num_kernels, replace=False)
            lin_comb[o, i] = bank[idx]

    # reset_parameters: kaiming_uniform_(a=sqrt(5)) -> bound = 1/sqrt(fan_in)
    fan_in = in_channels * num_kernels
    bound = 1.0 / math.sqrt(fan_in)
    kw_, kb_ = jax.random.split(key)
    weight = jax.random.uniform(kw_, (out_channels, in_channels, num_kernels),
                                jnp.float32, -bound, bound)
    bias = jax.random.uniform(kb_, (out_channels,), jnp.float32, -bound, bound)
    return jnp.asarray(lin_comb), weight, bias


# --------------------------------------------------------------------------
# Pure-JAX reference for verification (f32, HIGHEST precision)
# --------------------------------------------------------------------------
def reference_forward(x, weight, lin_comb, bias):
    weff = jnp.einsum('oik,oikdhw->oidhw', weight, lin_comb)
    y = lax.conv_general_dilated(
        x, weff, window_strides=(1, 1, 1), padding='VALID',
        dimension_numbers=('NCDHW', 'OIDHW', 'NCDHW'),
        precision=lax.Precision.HIGHEST)
    return y + bias[None, :, None, None, None]


if __name__ == "__main__":
    # small shapes consistent with the module; D=H=W=12 exercises >1 spatial tile
    N, Cin, Cout = 2, 3, 8
    D = H = W = 12
    KD = KH = KW = 3
    num_kernels, total_kernels = 4, 12

    key = jax.random.PRNGKey(0)
    kx, kp = jax.random.split(key)
    x = jax.random.normal(kx, (N, Cin, D, H, W), jnp.float32)   # NCDHW
    lin_comb, weight, bias = build_conv3d_rf_params(
        Cin, Cout, num_kernels, total_kernels, (KD, KH, KW), kp)

    y = jax.jit(conv3d_rf_forward)(x, weight, lin_comb, bias)
    y = jax.block_until_ready(y)

    y_ref = reference_forward(x, weight, lin_comb, bias)
    assert y.shape == y_ref.shape == (N, Cout, D - KD + 1, H - KH + 1, W - KW + 1)
    # Tolerance reflects bf16 MXU operands (f32 accumulation) vs the f32 HIGHEST reference.
    max_err = float(np.max(np.abs(np.asarray(y) - np.asarray(y_ref))))
    if not np.allclose(np.asarray(y), np.asarray(y_ref), atol=1e-1, rtol=5e-2):
        raise AssertionError(
            f"Pallas Conv3dRF does not match reference conv3d (max abs err {max_err})")

    print("KERNEL_OK")
</pallas_src>

<mosaic_0001>
module attributes {stable_mosaic.version = 11 : i64} {
  func.func @kernel(%arg0: i32, %arg1: i32, %arg2: memref<1x16x512xbf16, #tpu.memory_space<vmem>>, %arg3: memref<1x16x512xbf16, #tpu.memory_space<vmem>>, %arg4: memref<16x432xbf16, #tpu.memory_space<vmem>>, %arg5: memref<16x1xf32, #tpu.memory_space<vmem>>, %arg6: memref<1x16x512xf32, #tpu.memory_space<vmem>>, %arg7: memref<432x512xbf16, #tpu.memory_space<vmem>>) attributes {dimension_semantics = [#tpu.dimension_semantics<parallel>, #tpu.dimension_semantics<parallel>], iteration_bounds = array<i64: 2, 3>, scalar_prefetch = 0 : i64, scratch_operands = 1 : i64, tpu.core_type = #tpu.core_type<tc>, window_params = [{transform_indices = @transform_0, window_bounds = array<i64: 1, 16, 512>}, {transform_indices = @transform_1, window_bounds = array<i64: 1, 16, 512>}, {pipeline_mode = #tpu.pipeline_mode<synchronous>, transform_indices = @transform_2, window_bounds = array<i64: 16, 432>}, {pipeline_mode = #tpu.pipeline_mode<synchronous>, transform_indices = @transform_3, window_bounds = array<i64: 16, 1>}, {transform_indices = @transform_4, window_bounds = array<i64: 1, 16, 512>}]} {
    %c0 = arith.constant 0 : index
    %c0_0 = arith.constant 0 : index
    %c0_1 = arith.constant 0 : index
    %0 = vector.load %arg2[%c0, %c0_0, %c0_1] : memref<1x16x512xbf16, #tpu.memory_space<vmem>>, vector<1x16x512xbf16>
    %1 = vector.shape_cast %0 : vector<1x16x512xbf16> to vector<16x512xbf16>
    %c0_2 = arith.constant 0 : index
    %c0_3 = arith.constant 0 : index
    %2 = vector.load %arg7[%c0_2, %c0_3] : memref<432x512xbf16, #tpu.memory_space<vmem>>, vector<16x512xbf16>
    tpu.vector_store %arg7[%c0_2, %c0_3], %1 {strides = array<i32>} : memref<432x512xbf16, #tpu.memory_space<vmem>>, vector<16x512xbf16>,
    %c0_4 = arith.constant 0 : index
    %c0_5 = arith.constant 0 : index
    %c1 = arith.constant 1 : index
    %3 = vector.load %arg2[%c0_4, %c0_5, %c1] : memref<1x16x512xbf16, #tpu.memory_space<vmem>>, vector<1x16x511xbf16>
    %4 = vector.shape_cast %3 : vector<1x16x511xbf16> to vector<16x511xbf16>
    %c16 = arith.constant 16 : index
    %c0_6 = arith.constant 0 : index
    %5 = vector.load %arg7[%c16, %c0_6] : memref<432x512xbf16, #tpu.memory_space<vmem>>, vector<16x511xbf16>
    tpu.vector_store %arg7[%c16, %c0_6], %4 {strides = array<i32>} : memref<432x512xbf16, #tpu.memory_space<vmem>>, vector<16x511xbf16>,
    %c0_7 = arith.constant 0 : index
    %c0_8 = arith.constant 0 : index
    %c0_9 = arith.constant 0 : index
    %6 = vector.load %arg3[%c0_7, %c0_8, %c0_9] : memref<1x16x512xbf16, #tpu.memory_space<vmem>>, vector<1x16x1xbf16>
    %7 = vector.shape_cast %6 : vector<1x16x1xbf16> to vector<16x1xbf16>
    %c16_10 = arith.constant 16 : index
    %c511 = arith.constant 511 : index
    %8 = vector.load %arg7[%c16_10, %c511] : memref<432x512xbf16, #tpu.memory_space<vmem>>, vector<16x1xbf16>
    tpu.vector_store %arg7[%c16_10, %c511], %7 {strides = array<i32>} : memref<432x512xbf16, #tpu.memory_space<vmem>>, vector<16x1xbf16>,
    %c0_11 = arith.constant 0 : index
    %c0_12 = arith.constant 0 : index
    %c2 = arith.constant 2 : index
    %9 = vector.load %arg2[%c0_11, %c0_12, %c2] : memref<1x16x512xbf16, #tpu.memory_space<vmem>>, vector<1x16x510xbf16>
    %10 = vector.shape_cast %9 : vector<1x16x510xbf16> to vector<16x510xbf16>
    %c32 = arith.constant 32 : index
    %c0_13 = arith.constant 0 : index
    %11 = vector.load %arg7[%c32, %c0_13] : memref<432x512xbf16, #tpu.memory_space<vmem>>, vector<16x510xbf16>
    tpu.vector_store %arg7[%c32, %c0_13], %10 {strides = array<i32>} : memref<432x512xbf16, #tpu.memory_space<vmem>>, vector<16x510xbf16>,
    %c0_14 = arith.constant 0 : index
    %c0_15 = arith.constant 0 : index
    %c0_16 = arith.constant 0 : index
    %12 = vector.load %arg3[%c0_14, %c0_15, %c0_16] : memref<1x16x512xbf16, #tpu.memory_space<vmem>>, vector<1x16x2xbf16>
    %13 = vector.shape_cast %12 : vector<1x16x2xbf16> to vector<16x2xbf16>
    %c32_17 = arith.constant 32 : index
    %c510 = arith.constant 510 : index
    %14 = vector.load %arg7[%c32_17, %c510] : memref<432x512xbf16, #tpu.memory_space<vmem>>, vector<16x2xbf16>
    tpu.vector_store %arg7[%c32_17, %c510], %13 {strides = array<i32>} : memref<432x512xbf16, #tpu.memory_space<vmem>>, vector<16x2xbf16>,
    %c0_18 = arith.constant 0 : index
    %c0_19 = arith.constant 0 : index
    %c12 = arith.constant 12 : index
    %15 = vector.load %arg2[%c0_18, %c0_19, %c12] : memref<1x16x512xbf16, #tpu.memory_space<vmem>>, vector<1x16x500xbf16>
    %16 = vector.shape_cast %15 : vector<1x16x500xbf16> to vector<16x500xbf16>
    %c48 = arith.constant 48 : index
    %c0_20 = arith.constant 0 : index
    %17 = vector.load %arg7[%c48, %c0_20] : memref<432x512xbf16, #tpu.memory_space<vmem>>, vector<16x500xbf16>
    tpu.vector_store %arg7[%c48, %c0_20], %16 {strides = array<i32>} : memref<432x512xbf16, #tpu.memory_space<vmem>>, vector<16x500xbf16>,
    %c0_21 = arith.constant 0 : index
    %c0_22 = arith.constant 0 : index
    %c0_23 = arith.constant 0 : index
    %18 = vector.load %arg3[%c0_21, %c0_22, %c0_23] : memref<1x16x512xbf16, #tpu.memory_space<vmem>>, vector<1x16x12xbf16>
    %19 = vector.shape_cast %18 : vector<1x16x12xbf16> to vector<16x12xbf16>
    %c48_24 = arith.constant 48 : index
    %c500 = arith.constant 500 : index
    %20 = vector.load %arg7[%c48_24, %c500] : memref<432x512xbf16, #tpu.memory_space<vmem>>, vector<16x12xbf16>
    tpu.vector_store %arg7[%c48_24, %c500], %19 {strides = array<i32>} : memref<432x512xbf16, #tpu.memory_space<vmem>>, vector<16x12xbf16>,
    %c0_25 = arith.constant 0 : index
    %c0_26 = arith.constant 0 : index
    %c13 = arith.constant 13 : index
    %21 = vector.load %arg2[%c0_25, %c0_26, %c13] : memref<1x16x512xbf16, #tpu.memory_space<vmem>>, vector<1x16x499xbf16>
    %22 = vector.shape_cast %21 : vector<1x16x499xbf16> to vector<16x499xbf16>
    %c64 = arith.constant 64 : index
    %c0_27 = arith.constant 0 : index
    %23 = vector.load %arg7[%c64, %c0_27] : memref<432x512xbf16, #tpu.memory_space<vmem>>, vector<16x499xbf16>
    tpu.vector_store %arg7[%c64, %c0_27], %22 {strides = array<i32>} : memref<432x512xbf16, #tpu.memory_space<vmem>>, vector<16x499xbf16>,
    %c0_28 = arith.constant 0 : index
    %c0_29 = arith.constant 0 : index
    %c0_30 = arith.constant 0 : index
    %24 = vector.load %arg3[%c0_28, %c0_29, %c0_30] : memref<1x16x512xbf16, #tpu.memory_space<vmem>>, vector<1x16x13xbf16>
    %25 = vector.shape_cast %24 : vector<1x16x13xbf16> to vector<16x13xbf16>
    %c64_31 = arith.constant 64 : index
    %c499 = arith.constant 499 : index
    %26 = vector.load %arg7[%c64_31, %c499] : memref<432x512xbf16, #tpu.memory_space<vmem>>, vector<16x13xbf16>
    tpu.vector_store %arg7[%c64_31, %c499], %25 {strides = array<i32>} : memref<432x512xbf16, #tpu.memory_space<vmem>>, vector<16x13xbf16>,
    %c0_32 = arith.constant 0 : index
    %c0_33 = arith.constant 0 : index
    %c14 = arith.constant 14 : index
    %27 = vector.load %arg2[%c0_32, %c0_33, %c14] : memref<1x16x512xbf16, #tpu.memory_space<vmem>>, vector<1x16x498xbf16>
    %28 = vector.shape_cast %27 : vector<1x16x498xbf16> to vector<16x498xbf16>
    %c80 = arith.constant 80 : index
    %c0_34 = arith.constant 0 : index
    %29 = vector.load %arg7[%c80, %c0_34] : memref<432x512xbf16, #tpu.memory_space<vmem>>, vector<16x498xbf16>
    tpu.vector_store %arg7[%c80, %c0_34], %28 {strides = array<i32>} : memref<432x512xbf16, #tpu.memory_space<vmem>>, vector<16x498xbf16>,
    %c0_35 = arith.constant 0 : index
    %c0_36 = arith.constant 0 : index
    %c0_37 = arith.constant 0 : index
    %30 = vector.load %arg3[%c0_35, %c0_36, %c0_37] : memref<1x16x512xbf16, #tpu.memory_space<vmem>>, vector<1x16x14xbf16>
    %31 = vector.shape_cast %30 : vector<1x16x14xbf16> to vector<16x14xbf16>
    %c80_38 = arith.constant 80 : index
    %c498 = arith.constant 498 : index
    %32 = vector.load %arg7[%c80_38, %c498] : memref<432x512xbf16, #tpu.memory_space<vmem>>, vector<16x14xbf16>
    tpu.vector_store %arg7[%c80_38, %c498], %31 {strides = array<i32>} : memref<432x512xbf16, #tpu.memory_space<vmem>>, vector<16x14xbf16>,
    %c0_39 = arith.constant 0 : index
    %c0_40 = arith.constant 0 : index
    %c24 = arith.constant 24 : index
    %33 = vector.load %arg2[%c0_39, %c0_40, %c24] : memref<1x16x512xbf16, #tpu.memory_space<vmem>>, vector<1x16x488xbf16>
    %34 = vector.shape_cast %33 : vector<1x16x488xbf16> to vector<16x488xbf16>
    %c96 = arith.constant 96 : index
    %c0_41 = arith.constant 0 : index
    %35 = vector.load %arg7[%c96, %c0_41] : memref<432x512xbf16, #tpu.memory_space<vmem>>, vector<16x488xbf16>
    tpu.vector_store %arg7[%c96, %c0_41], %34 {strides = array<i32>} : memref<432x512xbf16, #tpu.memory_space<vmem>>, vector<16x488xbf16>,
    %c0_42 = arith.constant 0 : index
    %c0_43 = arith.constant 0 : index
    %c0_44 = arith.constant 0 : index
    %36 = vector.load %arg3[%c0_42, %c0_43, %c0_44] : memref<1x16x512xbf16, #tpu.memory_space<vmem>>, vector<1x16x24xbf16>
    %37 = vector.shape_cast %36 : vector<1x16x24xbf16> to vector<16x24xbf16>
    %c96_45 = arith.constant 96 : index
    %c488 = arith.constant 488 : index
    %38 = vector.load %arg7[%c96_45, %c488] : memref<432x512xbf16, #tpu.memory_space<vmem>>, vector<16x24xbf16>
    tpu.vector_store %arg7[%c96_45, %c488], %37 {strides = array<i32>} : memref<432x512xbf16, #tpu.memory_space<vmem>>, vector<16x24xbf16>,
    %c0_46 = arith.constant 0 : index
    %c0_47 = arith.constant 0 : index
    %c25 = arith.constant 25 : index
    %39 = vector.load %arg2[%c0_46, %c0_47, %c25] : memref<1x16x512xbf16, #tpu.memory_space<vmem>>, vector<1x16x487xbf16>
    %40 = vector.shape_cast %39 : vector<1x16x487xbf16> to vector<16x487xbf16>
    %c112 = arith.constant 112 : index
    %c0_48 = arith.constant 0 : index
    %41 = vector.load %arg7[%c112, %c0_48] : memref<432x512xbf16, #tpu.memory_space<vmem>>, vector<16x487xbf16>
    tpu.vector_store %arg7[%c112, %c0_48], %40 {strides = array<i32>} : memref<432x512xbf16, #tpu.memory_space<vmem>>, vector<16x487xbf16>,
    %c0_49 = arith.constant 0 : index
    %c0_50 = arith.constant 0 : index
    %c0_51 = arith.constant 0 : index
    %42 = vector.load %arg3[%c0_49, %c0_50, %c0_51] : memref<1x16x512xbf16, #tpu.memory_space<vmem>>, vector<1x16x25xbf16>
    %43 = vector.shape_cast %42 : vector<1x16x25xbf16> to vector<16x25xbf16>
    %c112_52 = arith.constant 112 : index
    %c487 = arith.constant 487 : index
    %44 = vector.load %arg7[%c112_52, %c487] : memref<432x512xbf16, #tpu.memory_space<vmem>>, vector<16x25xbf16>
    tpu.vector_store %arg7[%c112_52, %c487], %43 {strides = array<i32>} : memref<432x512xbf16, #tpu.memory_space<vmem>>, vector<16x25xbf16>,
    %c0_53 = arith.constant 0 : index
    %c0_54 = arith.constant 0 : index
    %c26 = arith.constant 26 : index
    %45 = vector.load %arg2[%c0_53, %c0_54, %c26] : memref<1x16x512xbf16, #tpu.memory_space<vmem>>, vector<1x16x486xbf16>
    %46 = vector.shape_cast %45 : vector<1x16x486xbf16> to vector<16x486xbf16>
    %c128 = arith.constant 128 : index
    %c0_55 = arith.constant 0 : index
    %47 = vector.load %arg7[%c128, %c0_55] : memref<432x512xbf16, #tpu.memory_space<vmem>>, vector<16x486xbf16>
    tpu.vector_store %arg7[%c128, %c0_55], %46 {strides = array<i32>} : memref<432x512xbf16, #tpu.memory_space<vmem>>, vector<16x486xbf16>,
    %c0_56 = arith.constant 0 : index
    %c0_57 = arith.constant 0 : index
    %c0_58 = arith.constant 0 : index
    %48 = vector.load %arg3[%c0_56, %c0_57, %c0_58] : memref<1x16x512xbf16, #tpu.memory_space<vmem>>, vector<1x16x26xbf16>
    %49 = vector.shape_cast %48 : vector<1x16x26xbf16> to vector<16x26xbf16>
    %c128_59 = arith.constant 128 : index
    %c486 = arith.constant 486 : index
    %50 = vector.load %arg7[%c128_59, %c486] : memref<432x512xbf16, #tpu.memory_space<vmem>>, vector<16x26xbf16>
    tpu.vector_store %arg7[%c128_59, %c486], %49 {strides = array<i32>} : memref<432x512xbf16, #tpu.memory_space<vmem>>, vector<16x26xbf16>,
    %c0_60 = arith.constant 0 : index
    %c0_61 = arith.constant 0 : index
    %c144 = arith.constant 144 : index
    %51 = vector.load %arg2[%c0_60, %c0_61, %c144] : memref<1x16x512xbf16, #tpu.memory_space<vmem>>, vector<1x16x368xbf16>
    %52 = vector.shape_cast %51 : vector<1x16x368xbf16> to vector<16x368xbf16>
    %c144_62 = arith.constant 144 : index
    %c0_63 = arith.constant 0 : index
    %53 = vector.load %arg7[%c144_62, %c0_63] : memref<432x512xbf16, #tpu.memory_space<vmem>>, vector<16x368xbf16>
    tpu.vector_store %arg7[%c144_62, %c0_63], %52 {strides = array<i32>} : memref<432x512xbf16, #tpu.memory_space<vmem>>, vector<16x368xbf16>,
    %c0_64 = arith.constant 0 : index
    %c0_65 = arith.constant 0 : index
    %c0_66 = arith.constant 0 : index
    %54 = vector.load %arg3[%c0_64, %c0_65, %c0_66] : memref<1x16x512xbf16, #tpu.memory_space<vmem>>, vector<1x16x144xbf16>
    %55 = vector.shape_cast %54 : vector<1x16x144xbf16> to vector<16x144xbf16>
    %c144_67 = arith.constant 144 : index
    %c368 = arith.constant 368 : index
    %56 = vector.load %arg7[%c144_67, %c368] : memref<432x512xbf16, #tpu.memory_space<vmem>>, vector<16x144xbf16>
    tpu.vector_store %arg7[%c144_67, %c368], %55 {strides = array<i32>} : memref<432x512xbf16, #tpu.memory_space<vmem>>, vector<16x144xbf16>,
    %c0_68 = arith.constant 0 : index
    %c0_69 = arith.constant 0 : index
    %c145 = arith.constant 145 : index
    %57 = vector.load %arg2[%c0_68, %c0_69, %c145] : memref<1x16x512xbf16, #tpu.memory_space<vmem>>, vector<1x16x367xbf16>
    %58 = vector.shape_cast %57 : vector<1x16x367xbf16> to vector<16x367xbf16>
    %c160 = arith.constant 160 : index
    %c0_70 = arith.constant 0 : index
    %59 = vector.load %arg7[%c160, %c0_70] : memref<432x512xbf16, #tpu.memory_space<vmem>>, vector<16x367xbf16>
    tpu.vector_store %arg7[%c160, %c0_70], %58 {strides = array<i32>} : memref<432x512xbf16, #tpu.memory_space<vmem>>, vector<16x367xbf16>,
    %c0_71 = arith.constant 0 : index
    %c0_72 = arith.constant 0 : index
    %c0_73 = arith.constant 0 : index
    %60 = vector.load %arg3[%c0_71, %c0_72, %c0_73] : memref<1x16x512xbf16, #tpu.memory_space<vmem>>, vector<1x16x145xbf16>
    %61 = vector.shape_cast %60 : vector<1x16x145xbf16> to vector<16x145xbf16>
    %c160_74 = arith.constant 160 : index
    %c367 = arith.constant 367 : index
    %62 = vector.load %arg7[%c160_74, %c367] : memref<432x512xbf16, #tpu.memory_space<vmem>>, vector<16x145xbf16>
    tpu.vector_store %arg7[%c160_74, %c367], %61 {strides = array<i32>} : memref<432x512xbf16, #tpu.memory_space<vmem>>, vector<16x145xbf16>,
    %c0_75 = arith.constant 0 : index
    %c0_76 = arith.constant 0 : index
    %c146 = arith.constant 146 : index
    %63 = vector.load %arg2[%c0_75, %c0_76, %c146] : memref<1x16x512xbf16, #tpu.memory_space<vmem>>, vector<1x16x366xbf16>
    %64 = vector.shape_cast %63 : vector<1x16x366xbf16> to vector<16x366xbf16>
    %c176 = arith.constant 176 : index
    %c0_77 = arith.constant 0 : index
    %65 = vector.load %arg7[%c176, %c0_77] : memref<432x512xbf16, #tpu.memory_space<vmem>>, vector<16x366xbf16>
    tpu.vector_store %arg7[%c176, %c0_77], %64 {strides = array<i32>} : memref<432x512xbf16, #tpu.memory_space<vmem>>, vector<16x366xbf16>,
    %c0_78 = arith.constant 0 : index
    %c0_79 = arith.constant 0 : index
    %c0_80 = arith.constant 0 : index
    %66 = vector.load %arg3[%c0_78, %c0_79, %c0_80] : memref<1x16x512xbf16, #tpu.memory_space<vmem>>, vector<1x16x146xbf16>
    %67 = vector.shape_cast %66 : vector<1x16x146xbf16> to vector<16x146xbf16>
    %c176_81 = arith.constant 176 : index
    %c366 = arith.constant 366 : index
    %68 = vector.load %arg7[%c176_81, %c366] : memref<432x512xbf16, #tpu.memory_space<vmem>>, vector<16x146xbf16>
    tpu.vector_store %arg7[%c176_81, %c366], %67 {strides = array<i32>} : memref<432x512xbf16, #tpu.memory_space<vmem>>, vector<16x146xbf16>,
    %c0_82 = arith.constant 0 : index
    %c0_83 = arith.constant 0 : index
    %c156 = arith.constant 156 : index
    %69 = vector.load %arg2[%c0_82, %c0_83, %c156] : memref<1x16x512xbf16, #tpu.memory_space<vmem>>, vector<1x16x356xbf16>
    %70 = vector.shape_cast %69 : vector<1x16x356xbf16> to vector<16x356xbf16>
    %c192 = arith.constant 192 : index
    %c0_84 = arith.constant 0 : index
    %71 = vector.load %arg7[%c192, %c0_84] : memref<432x512xbf16, #tpu.memory_space<vmem>>, vector<16x356xbf16>
    tpu.vector_store %arg7[%c192, %c0_84], %70 {strides = array<i32>} : memref<432x512xbf16, #tpu.memory_space<vmem>>, vector<16x356xbf16>,
    %c0_85 = arith.constant 0 : index
    %c0_86 = arith.constant 0 : index
    %c0_87 = arith.constant 0 : index
    %72 = vector.load %arg3[%c0_85, %c0_86, %c0_87] : memref<1x16x512xbf16, #tpu.memory_space<vmem>>, vector<1x16x156xbf16>
    %73 = vector.shape_cast %72 : vector<1x16x156xbf16> to vector<16x156xbf16>
    %c192_88 = arith.constant 192 : index
    %c356 = arith.constant 356 : index
    %74 = vector.load %arg7[%c192_88, %c356] : memref<432x512xbf16, #tpu.memory_space<vmem>>, vector<16x156xbf16>
    tpu.vector_store %arg7[%c192_88, %c356], %73 {strides = array<i32>} : memref<432x512xbf16, #tpu.memory_space<vmem>>, vector<16x156xbf16>,
    %c0_89 = arith.constant 0 : index
    %c0_90 = arith.constant 0 : index
    %c157 = arith.constant 157 : index
    %75 = vector.load %arg2[%c0_89, %c0_90, %c157] : memref<1x16x512xbf16, #tpu.memory_space<vmem>>, vector<1x16x355xbf16>
    %76 = vector.shape_cast %75 : vector<1x16x355xbf16> to vector<16x355xbf16>
    %c208 = arith.constant 208 : index
    %c0_91 = arith.constant 0 : index
    %77 = vector.load %arg7[%c208, %c0_91] : memref<432x512xbf16, #tpu.memory_space<vmem>>, vector<16x355xbf16>
    tpu.vector_store %arg7[%c208, %c0_91], %76 {strides = array<i32>} : memref<432x512xbf16, #tpu.memory_space<vmem>>, vector<16x355xbf16>,
    %c0_92 = arith.constant 0 : index
    %c0_93 = arith.constant 0 : index
    %c0_94 = arith.constant 0 : index
    %78 = vector.load %arg3[%c0_92, %c0_93, %c0_94] : memref<1x16x512xbf16, #tpu.memory_space<vmem>>, vector<1x16x157xbf16>
    %79 = vector.shape_cast %78 : vector<1x16x157xbf16> to vector<16x157xbf16>
    %c208_95 = arith.constant 208 : index
    %c355 = arith.constant 355 : index
    %80 = vector.load %arg7[%c208_95, %c355] : memref<432x512xbf16, #tpu.memory_space<vmem>>, vector<16x157xbf16>
    tpu.vector_store %arg7[%c208_95, %c355], %79 {strides = array<i32>} : memref<432x512xbf16, #tpu.memory_space<vmem>>, vector<16x157xbf16>,
    %c0_96 = arith.constant 0 : index
    %c0_97 = arith.constant 0 : index
    %c158 = arith.constant 158 : index
    %81 = vector.load %arg2[%c0_96, %c0_97, %c158] : memref<1x16x512xbf16, #tpu.memory_space<vmem>>, vector<1x16x354xbf16>
    %82 = vector.shape_cast %81 : vector<1x16x354xbf16> to vector<16x354xbf16>
    %c224 = arith.constant 224 : index
    %c0_98 = arith.constant 0 : index
    %83 = vector.load %arg7[%c224, %c0_98] : memref<432x512xbf16, #tpu.memory_space<vmem>>, vector<16x354xbf16>
    tpu.vector_store %arg7[%c224, %c0_98], %82 {strides = array<i32>} : memref<432x512xbf16, #tpu.memory_space<vmem>>, vector<16x354xbf16>,
    %c0_99 = arith.constant 0 : index
    %c0_100 = arith.constant 0 : index
    %c0_101 = arith.constant 0 : index
    %84 = vector.load %arg3[%c0_99, %c0_100, %c0_101] : memref<1x16x512xbf16, #tpu.memory_space<vmem>>, vector<1x16x158xbf16>
    %85 = vector.shape_cast %84 : vector<1x16x158xbf16> to vector<16x158xbf16>
    %c224_102 = arith.constant 224 : index
    %c354 = arith.constant 354 : index
    %86 = vector.load %arg7[%c224_102, %c354] : memref<432x512xbf16, #tpu.memory_space<vmem>>, vector<16x158xbf16>
    tpu.vector_store %arg7[%c224_102, %c354], %85 {strides = array<i32>} : memref<432x512xbf16, #tpu.memory_space<vmem>>, vector<16x158xbf16>,
    %c0_103 = arith.constant 0 : index
    %c0_104 = arith.constant 0 : index
    %c168 = arith.constant 168 : index
    %87 = vector.load %arg2[%c0_103, %c0_104, %c168] : memref<1x16x512xbf16, #tpu.memory_space<vmem>>, vector<1x16x344xbf16>
    %88 = vector.shape_cast %87 : vector<1x16x344xbf16> to vector<16x344xbf16>
    %c240 = arith.constant 240 : index
    %c0_105 = arith.constant 0 : index
    %89 = vector.load %arg7[%c240, %c0_105] : memref<432x512xbf16, #tpu.memory_space<vmem>>, vector<16x344xbf16>
    tpu.vector_store %arg7[%c240, %c0_105], %88 {strides = array<i32>} : memref<432x512xbf16, #tpu.memory_space<vmem>>, vector<16x344xbf16>,
    %c0_106 = arith.constant 0 : index
    %c0_107 = arith.constant 0 : index
    %c0_108 = arith.constant 0 : index
    %90 = vector.load %arg3[%c0_106, %c0_107, %c0_108] : memref<1x16x512xbf16, #tpu.memory_space<vmem>>, vector<1x16x168xbf16>
    %91 = vector.shape_cast %90 : vector<1x16x168xbf16> to vector<16x168xbf16>
    %c240_109 = arith.constant 240 : index
    %c344 = arith.constant 344 : index
    %92 = vector.load %arg7[%c240_109, %c344] : memref<432x512xbf16, #tpu.memory_space<vmem>>, vector<16x168xbf16>
    tpu.vector_store %arg7[%c240_109, %c344], %91 {strides = array<i32>} : memref<432x512xbf16, #tpu.memory_space<vmem>>, vector<16x168xbf16>,
    %c0_110 = arith.constant 0 : index
    %c0_111 = arith.constant 0 : index
    %c169 = arith.constant 169 : index
    %93 = vector.load %arg2[%c0_110, %c0_111, %c169] : memref<1x16x512xbf16, #tpu.memory_space<vmem>>, vector<1x16x343xbf16>
    %94 = vector.shape_cast %93 : vector<1x16x343xbf16> to vector<16x343xbf16>
    %c256 = arith.constant 256 : index
    %c0_112 = arith.constant 0 : index
    %95 = vector.load %arg7[%c256, %c0_112] : memref<432x512xbf16, #tpu.memory_space<vmem>>, vector<16x343xbf16>
    tpu.vector_store %arg7[%c256, %c0_112], %94 {strides = array<i32>} : memref<432x512xbf16, #tpu.memory_space<vmem>>, vector<16x343xbf16>,
    %c0_113 = arith.constant 0 : index
    %c0_114 = arith.constant 0 : index
    %c0_115 = arith.constant 0 : index
    %96 = vector.load %arg3[%c0_113, %c0_114, %c0_115] : memref<1x16x512xbf16, #tpu.memory_space<vmem>>, vector<1x16x169xbf16>
    %97 = vector.shape_cast %96 : vector<1x16x169xbf16> to vector<16x169xbf16>
    %c256_116 = arith.constant 256 : index
    %c343 = arith.constant 343 : index
    %98 = vector.load %arg7[%c256_116, %c343] : memref<432x512xbf16, #tpu.memory_space<vmem>>, vector<16x169xbf16>
    tpu.vector_store %arg7[%c256_116, %c343], %97 {strides = array<i32>} : memref<432x512xbf16, #tpu.memory_space<vmem>>, vector<16x169xbf16>,
    %c0_117 = arith.constant 0 : index
    %c0_118 = arith.constant 0 : index
    %c170 = arith.constant 170 : index
    %99 = vector.load %arg2[%c0_117, %c0_118, %c170] : memref<1x16x512xbf16, #tpu.memory_space<vmem>>, vector<1x16x342xbf16>
    %100 = vector.shape_cast %99 : vector<1x16x342xbf16> to vector<16x342xbf16>
    %c272 = arith.constant 272 : index
    %c0_119 = arith.constant 0 : index
    %101 = vector.load %arg7[%c272, %c0_119] : memref<432x512xbf16, #tpu.memory_space<vmem>>, vector<16x342xbf16>
    tpu.vector_store %arg7[%c272, %c0_119], %100 {strides = array<i32>} : memref<432x512xbf16, #tpu.memory_space<vmem>>, vector<16x342xbf16>,
    %c0_120 = arith.constant 0 : index
    %c0_121 = arith.constant 0 : index
    %c0_122 = arith.constant 0 : index
    %102 = vector.load %arg3[%c0_120, %c0_121, %c0_122] : memref<1x16x512xbf16, #tpu.memory_space<vmem>>, vector<1x16x170xbf16>
    %103 = vector.shape_cast %102 : vector<1x16x170xbf16> to vector<16x170xbf16>
    %c272_123 = arith.constant 272 : index
    %c342 = arith.constant 342 : index
    %104 = vector.load %arg7[%c272_123, %c342] : memref<432x512xbf16, #tpu.memory_space<vmem>>, vector<16x170xbf16>
    tpu.vector_store %arg7[%c272_123, %c342], %103 {strides = array<i32>} : memref<432x512xbf16, #tpu.memory_space<vmem>>, vector<16x170xbf16>,
    %c0_124 = arith.constant 0 : index
    %c0_125 = arith.constant 0 : index
    %c288 = arith.constant 288 : index
    %105 = vector.load %arg2[%c0_124, %c0_125, %c288] : memref<1x16x512xbf16, #tpu.memory_space<vmem>>, vector<1x16x224xbf16>
    %106 = vector.shape_cast %105 : vector<1x16x224xbf16> to vector<16x224xbf16>
    %c288_126 = arith.constant 288 : index
    %c0_127 = arith.constant 0 : index
    %107 = vector.load %arg7[%c288_126, %c0_127] : memref<432x512xbf16, #tpu.memory_space<vmem>>, vector<16x224xbf16>
    tpu.vector_store %arg7[%c288_126, %c0_127], %106 {strides = array<i32>} : memref<432x512xbf16, #tpu.memory_space<vmem>>, vector<16x224xbf16>,
    %c0_128 = arith.constant 0 : index
    %c0_129 = arith.constant 0 : index
    %c0_130 = arith.constant 0 : index
    %108 = vector.load %arg3[%c0_128, %c0_129, %c0_130] : memref<1x16x512xbf16, #tpu.memory_space<vmem>>, vector<1x16x288xbf16>
    %109 = vector.shape_cast %108 : vector<1x16x288xbf16> to vector<16x288xbf16>
    %c288_131 = arith.constant 288 : index
    %c224_132 = arith.constant 224 : index
    %110 = vector.load %arg7[%c288_131, %c224_132] : memref<432x512xbf16, #tpu.memory_space<vmem>>, vector<16x288xbf16>
    tpu.vector_store %arg7[%c288_131, %c224_132], %109 {strides = array<i32>} : memref<432x512xbf16, #tpu.memory_space<vmem>>, vector<16x288xbf16>,
    %c0_133 = arith.constant 0 : index
    %c0_134 = arith.constant 0 : index
    %c289 = arith.constant 289 : index
    %111 = vector.load %arg2[%c0_133, %c0_134, %c289] : memref<1x16x512xbf16, #tpu.memory_space<vmem>>, vector<1x16x223xbf16>
    %112 = vector.shape_cast %111 : vector<1x16x223xbf16> to vector<16x223xbf16>
    %c304 = arith.constant 304 : index
    %c0_135 = arith.constant 0 : index
    %113 = vector.load %arg7[%c304, %c0_135] : memref<432x512xbf16, #tpu.memory_space<vmem>>, vector<16x223xbf16>
    tpu.vector_store %arg7[%c304, %c0_135], %112 {strides = array<i32>} : memref<432x512xbf16, #tpu.memory_space<vmem>>, vector<16x223xbf16>,
    %c0_136 = arith.constant 0 : index
    %c0_137 = arith.constant 0 : index
    %c0_138 = arith.constant 0 : index
    %114 = vector.load %arg3[%c0_136, %c0_137, %c0_138] : memref<1x16x512xbf16, #tpu.memory_space<vmem>>, vector<1x16x289xbf16>
    %115 = vector.shape_cast %114 : vector<1x16x289xbf16> to vector<16x289xbf16>
    %c304_139 = arith.constant 304 : index
    %c223 = arith.constant 223 : index
    %116 = vector.load %arg7[%c304_139, %c223] : memref<432x512xbf16, #tpu.memory_space<vmem>>, vector<16x289xbf16>
    tpu.vector_store %arg7[%c304_139, %c223], %115 {strides = array<i32>} : memref<432x512xbf16, #tpu.memory_space<vmem>>, vector<16x289xbf16>,
    %c0_140 = arith.constant 0 : index
    %c0_141 = arith.constant 0 : index
    %c290 = arith.constant 290 : index
    %117 = vector.load %arg2[%c0_140, %c0_141, %c290] : memref<1x16x512xbf16, #tpu.memory_space<vmem>>, vector<1x16x222xbf16>
    %118 = vector.shape_cast %117 : vector<1x16x222xbf16> to vector<16x222xbf16>
    %c320 = arith.constant 320 : index
    %c0_142 = arith.constant 0 : index
    %119 = vector.load %arg7[%c320, %c0_142] : memref<432x512xbf16, #tpu.memory_space<vmem>>, vector<16x222xbf16>
    tpu.vector_store %arg7[%c320, %c0_142], %118 {strides = array<i32>} : memref<432x512xbf16, #tpu.memory_space<vmem>>, vector<16x222xbf16>,
    %c0_143 = arith.constant 0 : index
    %c0_144 = arith.constant 0 : index
    %c0_145 = arith.constant 0 : index
    %120 = vector.load %arg3[%c0_143, %c0_144, %c0_145] : memref<1x16x512xbf16, #tpu.memory_space<vmem>>, vector<1x16x290xbf16>
    %121 = vector.shape_cast %120 : vector<1x16x290xbf16> to vector<16x290xbf16>
    %c320_146 = arith.constant 320 : index
    %c222 = arith.constant 222 : index
    %122 = vector.load %arg7[%c320_146, %c222] : memref<432x512xbf16, #tpu.memory_space<vmem>>, vector<16x290xbf16>
    tpu.vector_store %arg7[%c320_146, %c222], %121 {strides = array<i32>} : memref<432x512xbf16, #tpu.memory_space<vmem>>, vector<16x290xbf16>,
    %c0_147 = arith.constant 0 : index
    %c0_148 = arith.constant 0 : index
    %c300 = arith.constant 300 : index
    %123 = vector.load %arg2[%c0_147, %c0_148, %c300] : memref<1x16x512xbf16, #tpu.memory_space<vmem>>, vector<1x16x212xbf16>
    %124 = vector.shape_cast %123 : vector<1x16x212xbf16> to vector<16x212xbf16>
    %c336 = arith.constant 336 : index
    %c0_149 = arith.constant 0 : index
    %125 = vector.load %arg7[%c336, %c0_149] : memref<432x512xbf16, #tpu.memory_space<vmem>>, vector<16x212xbf16>
    tpu.vector_store %arg7[%c336, %c0_149], %124 {strides = array<i32>} : memref<432x512xbf16, #tpu.memory_space<vmem>>, vector<16x212xbf16>,
    %c0_150 = arith.constant 0 : index
    %c0_151 = arith.constant 0 : index
    %c0_152 = arith.constant 0 : index
    %126 = vector.load %arg3[%c0_150, %c0_151, %c0_152] : memref<1x16x512xbf16, #tpu.memory_space<vmem>>, vector<1x16x300xbf16>
    %127 = vector.shape_cast %126 : vector<1x16x300xbf16> to vector<16x300xbf16>
    %c336_153 = arith.constant 336 : index
    %c212 = arith.constant 212 : index
    %128 = vector.load %arg7[%c336_153, %c212] : memref<432x512xbf16, #tpu.memory_space<vmem>>, vector<16x300xbf16>
    tpu.vector_store %arg7[%c336_153, %c212], %127 {strides = array<i32>} : memref<432x512xbf16, #tpu.memory_space<vmem>>, vector<16x300xbf16>,
    %c0_154 = arith.constant 0 : index
    %c0_155 = arith.constant 0 : index
    %c301 = arith.constant 301 : index
    %129 = vector.load %arg2[%c0_154, %c0_155, %c301] : memref<1x16x512xbf16, #tpu.memory_space<vmem>>, vector<1x16x211xbf16>
    %130 = vector.shape_cast %129 : vector<1x16x211xbf16> to vector<16x211xbf16>
    %c352 = arith.constant 352 : index
    %c0_156 = arith.constant 0 : index
    %131 = vector.load %arg7[%c352, %c0_156] : memref<432x512xbf16, #tpu.memory_space<vmem>>, vector<16x211xbf16>
    tpu.vector_store %arg7[%c352, %c0_156], %130 {strides = array<i32>} : memref<432x512xbf16, #tpu.memory_space<vmem>>, vector<16x211xbf16>,
    %c0_157 = arith.constant 0 : index
    %c0_158 = arith.constant 0 : index
    %c0_159 = arith.constant 0 : index
    %132 = vector.load %arg3[%c0_157, %c0_158, %c0_159] : memref<1x16x512xbf16, #tpu.memory_space<vmem>>, vector<1x16x301xbf16>
    %133 = vector.shape_cast %132 : vector<1x16x301xbf16> to vector<16x301xbf16>
    %c352_160 = arith.constant 352 : index
    %c211 = arith.constant 211 : index
    %134 = vector.load %arg7[%c352_160, %c211] : memref<432x512xbf16, #tpu.memory_space<vmem>>, vector<16x301xbf16>
    tpu.vector_store %arg7[%c352_160, %c211], %133 {strides = array<i32>} : memref<432x512xbf16, #tpu.memory_space<vmem>>, vector<16x301xbf16>,
    %c0_161 = arith.constant 0 : index
    %c0_162 = arith.constant 0 : index
    %c302 = arith.constant 302 : index
    %135 = vector.load %arg2[%c0_161, %c0_162, %c302] : memref<1x16x512xbf16, #tpu.memory_space<vmem>>, vector<1x16x210xbf16>
    %136 = vector.shape_cast %135 : vector<1x16x210xbf16> to vector<16x210xbf16>
    %c368_163 = arith.constant 368 : index
    %c0_164 = arith.constant 0 : index
    %137 = vector.load %arg7[%c368_163, %c0_164] : memref<432x512xbf16, #tpu.memory_space<vmem>>, vector<16x210xbf16>
    tpu.vector_store %arg7[%c368_163, %c0_164], %136 {strides = array<i32>} : memref<432x512xbf16, #tpu.memory_space<vmem>>, vector<16x210xbf16>,
    %c0_165 = arith.constant 0 : index
    %c0_166 = arith.constant 0 : index
    %c0_167 = arith.constant 0 : index
    %138 = vector.load %arg3[%c0_165, %c0_166, %c0_167] : memref<1x16x512xbf16, #tpu.memory_space<vmem>>, vector<1x16x302xbf16>
    %139 = vector.shape_cast %138 : vector<1x16x302xbf16> to vector<16x302xbf16>
    %c368_168 = arith.constant 368 : index
    %c210 = arith.constant 210 : index
    %140 = vector.load %arg7[%c368_168, %c210] : memref<432x512xbf16, #tpu.memory_space<vmem>>, vector<16x302xbf16>
    tpu.vector_store %arg7[%c368_168, %c210], %139 {strides = array<i32>} : memref<432x512xbf16, #tpu.memory_space<vmem>>, vector<16x302xbf16>,
    %c0_169 = arith.constant 0 : index
    %c0_170 = arith.constant 0 : index
    %c312 = arith.constant 312 : index
    %141 = vector.load %arg2[%c0_169, %c0_170, %c312] : memref<1x16x512xbf16, #tpu.memory_space<vmem>>, vector<1x16x200xbf16>
    %142 = vector.shape_cast %141 : vector<1x16x200xbf16> to vector<16x200xbf16>
    %c384 = arith.constant 384 : index
    %c0_171 = arith.constant 0 : index
    %143 = vector.load %arg7[%c384, %c0_171] : memref<432x512xbf16, #tpu.memory_space<vmem>>, vector<16x200xbf16>
    tpu.vector_store %arg7[%c384, %c0_171], %142 {strides = array<i32>} : memref<432x512xbf16, #tpu.memory_space<vmem>>, vector<16x200xbf16>,
    %c0_172 = arith.constant 0 : index
    %c0_173 = arith.constant 0 : index
    %c0_174 = arith.constant 0 : index
    %144 = vector.load %arg3[%c0_172, %c0_173, %c0_174] : memref<1x16x512xbf16, #tpu.memory_space<vmem>>, vector<1x16x312xbf16>
    %145 = vector.shape_cast %144 : vector<1x16x312xbf16> to vector<16x312xbf16>
    %c384_175 = arith.constant 384 : index
    %c200 = arith.constant 200 : index
    %146 = vector.load %arg7[%c384_175, %c200] : memref<432x512xbf16, #tpu.memory_space<vmem>>, vector<16x312xbf16>
    tpu.vector_store %arg7[%c384_175, %c200], %145 {strides = array<i32>} : memref<432x512xbf16, #tpu.memory_space<vmem>>, vector<16x312xbf16>,
    %c0_176 = arith.constant 0 : index
    %c0_177 = arith.constant 0 : index
    %c313 = arith.constant 313 : index
    %147 = vector.load %arg2[%c0_176, %c0_177, %c313] : memref<1x16x512xbf16, #tpu.memory_space<vmem>>, vector<1x16x199xbf16>
    %148 = vector.shape_cast %147 : vector<1x16x199xbf16> to vector<16x199xbf16>
    %c400 = arith.constant 400 : index
    %c0_178 = arith.constant 0 : index
    %149 = vector.load %arg7[%c400, %c0_178] : memref<432x512xbf16, #tpu.memory_space<vmem>>, vector<16x199xbf16>
    tpu.vector_store %arg7[%c400, %c0_178], %148 {strides = array<i32>} : memref<432x512xbf16, #tpu.memory_space<vmem>>, vector<16x199xbf16>,
    %c0_179 = arith.constant 0 : index
    %c0_180 = arith.constant 0 : index
    %c0_181 = arith.constant 0 : index
    %150 = vector.load %arg3[%c0_179, %c0_180, %c0_181] : memref<1x16x512xbf16, #tpu.memory_space<vmem>>, vector<1x16x313xbf16>
    %151 = vector.shape_cast %150 : vector<1x16x313xbf16> to vector<16x313xbf16>
    %c400_182 = arith.constant 400 : index
    %c199 = arith.constant 199 : index
    %152 = vector.load %arg7[%c400_182, %c199] : memref<432x512xbf16, #tpu.memory_space<vmem>>, vector<16x313xbf16>
    tpu.vector_store %arg7[%c400_182, %c199], %151 {strides = array<i32>} : memref<432x512xbf16, #tpu.memory_space<vmem>>, vector<16x313xbf16>,
    %c0_183 = arith.constant 0 : index
    %c0_184 = arith.constant 0 : index
    %c314 = arith.constant 314 : index
    %153 = vector.load %arg2[%c0_183, %c0_184, %c314] : memref<1x16x512xbf16, #tpu.memory_space<vmem>>, vector<1x16x198xbf16>
    %154 = vector.shape_cast %153 : vector<1x16x198xbf16> to vector<16x198xbf16>
    %c416 = arith.constant 416 : index
    %c0_185 = arith.constant 0 : index
    %155 = vector.load %arg7[%c416, %c0_185] : memref<432x512xbf16, #tpu.memory_space<vmem>>, vector<16x198xbf16>
    tpu.vector_store %arg7[%c416, %c0_185], %154 {strides = array<i32>} : memref<432x512xbf16, #tpu.memory_space<vmem>>, vector<16x198xbf16>,
    %c0_186 = arith.constant 0 : index
    %c0_187 = arith.constant 0 : index
    %c0_188 = arith.constant 0 : index
    %156 = vector.load %arg3[%c0_186, %c0_187, %c0_188] : memref<1x16x512xbf16, #tpu.memory_space<vmem>>, vector<1x16x314xbf16>
    %157 = vector.shape_cast %156 : vector<1x16x314xbf16> to vector<16x314xbf16>
    %c416_189 = arith.constant 416 : index
    %c198 = arith.constant 198 : index
    %158 = vector.load %arg7[%c416_189, %c198] : memref<432x512xbf16, #tpu.memory_space<vmem>>, vector<16x314xbf16>
    tpu.vector_store %arg7[%c416_189, %c198], %157 {strides = array<i32>} : memref<432x512xbf16, #tpu.memory_space<vmem>>, vector<16x314xbf16>,
    %c0_190 = arith.constant 0 : index
    %c0_191 = arith.constant 0 : index
    %159 = vector.load %arg4[%c0_190, %c0_191] : memref<16x432xbf16, #tpu.memory_space<vmem>>, vector<16x432xbf16>
    %c0_192 = arith.constant 0 : index
    %c0_193 = arith.constant 0 : index
    %160 = vector.load %arg7[%c0_192, %c0_193] : memref<432x512xbf16, #tpu.memory_space<vmem>>, vector<432x512xbf16>
    %cst = arith.constant dense<0.000000e+00> : vector<16x512xf32>
    %161 = tpu.matmul %159, %160, %cst {dimension_numbers = #tpu.dot_dimension_numbers<[1], [0], [0], [1], [0, 0, 1, 1], [], []>} : vector<16x432xbf16>, vector<432x512xbf16>, vector<16x512xf32> -> vector<16x512xf32>
    %c0_194 = arith.constant 0 : index
    %c0_195 = arith.constant 0 : index
    %162 = vector.load %arg5[%c0_194, %c0_195] : memref<16x1xf32, #tpu.memory_space<vmem>>, vector<16x1xf32>
    %163 = vector.broadcast %162 : vector<16x1xf32> to vector<16x512xf32>
    %164 = arith.addf %161, %163 : vector<16x512xf32>
    %c0_196 = arith.constant 0 : index
    %c0_197 = arith.constant 0 : index
    %c0_198 = arith.constant 0 : index
    %165 = vector.load %arg6[%c0_196, %c0_197, %c0_198] : memref<1x16x512xf32, #tpu.memory_space<vmem>>, vector<1x16x512xf32>
    %166 = vector.shape_cast %165 : vector<1x16x512xf32> to vector<16x512xf32>
    %167 = vector.shape_cast %164 : vector<16x512xf32> to vector<1x16x512xf32>
    tpu.vector_store %arg6[%c0_196, %c0_197, %c0_198], %167 {strides = array<i32>} : memref<1x16x512xf32, #tpu.memory_space<vmem>>, vector<1x16x512xf32>,
    return
  }
  func.func @transform_0(%arg0: i32, %arg1: i32) -> (i32, i32, i32) {
    %c0_i32 = arith.constant 0 : i32
    %c0_i32_0 = arith.constant 0 : i32
    return %arg0, %c0_i32, %arg1 : i32, i32, i32
  }
  func.func @transform_1(%arg0: i32, %arg1: i32) -> (i32, i32, i32) {
    %c1_i32 = arith.constant 1 : i32
    %0 = arith.addi %arg1, %c1_i32 : i32
    %c0_i32 = arith.constant 0 : i32
    %c0_i32_0 = arith.constant 0 : i32
    return %arg0, %c0_i32, %0 : i32, i32, i32
  }
  func.func @transform_2(%arg0: i32, %arg1: i32) -> (i32, i32) {
    %c0_i32 = arith.constant 0 : i32
    %c0_i32_0 = arith.constant 0 : i32
    %c0_i32_1 = arith.constant 0 : i32
    return %c0_i32, %c0_i32_0 : i32, i32
  }
  func.func @transform_3(%arg0: i32, %arg1: i32) -> (i32, i32) {
    %c0_i32 = arith.constant 0 : i32
    %c0_i32_0 = arith.constant 0 : i32
    %c0_i32_1 = arith.constant 0 : i32
    return %c0_i32, %c0_i32_0 : i32, i32
  }
  func.func @transform_4(%arg0: i32, %arg1: i32) -> (i32, i32, i32) {
    %c0_i32 = arith.constant 0 : i32
    %c0_i32_0 = arith.constant 0 : i32
    return %arg0, %c0_i32, %arg1 : i32, i32, i32
  }
}

</mosaic_0001>

<bundles_post_ra>
// kernel: conv3d_rf_forward.1
= control target key start
LH: loop header
LB: loop body
LE: loop exit
PB: predicated region body
PF: predicated region fallthrough
CT: control target
= control target key end

     0   :  { %s2621_s15 = smov 0   ;;  %s2623_s16 = smov 0   ;;  %s3052_s0 = inlined_call_operand.vmem [shape: bf16[2,16,2048], index: 0, kind: input, shape index: {}, may-alias: {0,1}]   ;;  %s3053_s1 = inlined_call_operand.vmem [shape: bf16[2,16,2048], index: 1, kind: input, shape index: {}, may-alias: {0,1}]   ;;  %s3054_s2 = inlined_call_operand.vmem [shape: bf16[16,432], index: 2, kind: input, shape index: {}]   ;;  %s3055_s3 = inlined_call_operand.vmem [shape: f32[16,1], index: 3, kind: input, shape index: {}]   ;;  %s3056_s4 = inlined_call_operand.vmem [shape: f32[2,16,1536], index: 4, kind: output, shape index: {}]  }
   0x1   :  { %s2625_s17 = smov 0   ;;  %s2627_s18 = smov 0  }
   0x2   :  { %s2629_s19 = smov 0   ;;  %s2631_s20 = smov 0  }
   0x3   :  { %s2633_s21 = smov 0   ;;  %s2635_s22 = smov 0  }
   0x4   :  { %s2637_s23 = smov 0  }
   0x5 LB: > { %s2166_s24 = sadd.s32 4294967295, %s2567_s23   ;;  %s23_s25 = sadd.s32 1, %s2559_s21  ;;  %s2567_s23 = sphi %s2637_s23, %s14_s23   ;;  %s2563_s22 = sphi %s2635_s22, %s3067_s22   ;;  %s2559_s21 = sphi %s2633_s21, %s3066_s21   ;;  %s2555_s20 = sphi %s2631_s20, %s3065_s20   ;;  %s2551_s19 = sphi %s2629_s19, %s3064_s19   ;;  %s2547_s18 = sphi %s2627_s18, %s3063_s18   ;;  %s2543_s17 = sphi %s2625_s17, %s3062_s17   ;;  %s2539_s16 = sphi %s2623_s16, %s3061_s16   ;;  %s2535_s15 = sphi %s2621_s15, %s3060_s15  }
   0x6   : > { %p24_p0 = scmp.ge.s32.totalorder %s23_s25, 3  ;;  %s26_s26 = sadd.s32 1, %s2563_s22 }
   0x7   : > { %s35_s27 = sadd.s32 1, %s2547_s18  ;;  %p42_p1 = scmp.ne.s32.totalorder %s2547_s18, %s2543_s17 }
   0x8   : > { %s2672_s28 = scalar_select %p24_p0, 0, %s23_s25  }
   0x9   : > { %s3069_s26 = smov (!%p24_p0, %s26_s26), %s2563_s22  ;;  %p43_p2 = scmp.eq.s32.totalorder %s2567_s23, 0 }
   0xa   : > { %s31_s29 = ssub.s32 %s2559_s21, %s2672_s28  ;;  %p28_p3 = scmp.ge.s32.totalorder %s3069_s26, 2 }
   0xb   : > { %s59_s30 = sadd.s32 1, %s2672_s28  ;;  %p2684_p4 = por %p43_p2, %p42_p1 }
   0xc   : > { %s61_s6 = ssub.s32 %s23_s25, %s59_s30  ;;  %s3071_s26 = smov (%p28_p3, %s3069_s26), 0 }
   0xd   : > { %s65_s7 = sadd.s32 1, %s2539_s16  ;;  %p72_p5 = scmp.ne.s32.totalorder %s2539_s16, %s2535_s15 }
   0xe   : > { %s30_s8 = ssub.s32 %s2563_s22, %s3071_s26  ;;  %p146_p6 = scmp.eq.s32.totalorder %s2166_s24, 5 }
   0xf   : > { %s32_s9 = sor.u32 %s31_s29, %s30_s8  ;;  %s62_s10 = sor.u32 %s61_s6, %s30_s8 }
  0x10   : > { %p33_p7 = scmp.eq.s32.totalorder %s32_s9, 0  ;;  %p63_p8 = scmp.eq.s32.totalorder %s62_s10, 0 }
  0x11   : > { %p2697_p9 = por %p72_p5, %p43_p2  ;;  %p2704_p10 = por %p146_p6, %p42_p1 }
  0x12   : > { %s2709_s13 = scalar_select %p33_p7, %s2547_s18, %s35_s27  }
  0x13   : > { %s2712_s14 = scalar_select %p63_p8, %s2539_s16, %s65_s7  }
  0x14   : > { %p2169_p11 = scmp.ge.s32.totalorder %s2567_s23, 6 }
  0x16   : > { %174 = sbr.rel (%p2169_p11) target bundleno = 47 (0x2f), region = 24 }
  0x1d   : > { %177 = sbr.rel (!%p2684_p4) target bundleno = 38 (0x26), region = 28  ;;  %s179_s24 = sand.u32 (%p2684_p4), 1, %s2547_s18  }
  0x1e   : > { %s2171_s25 = sshll.u32 (%p2684_p4), %s2559_s21, 2  ;;  %s2170_s29 = sshll.u32 (%p2684_p4), %s179_s24, 5 }
  0x1f   : > { %s2172_s30 = sshll.u32 (%p2684_p4), %s2563_s22, 5  ;;  %s181_s10 = scalar_lea.vmem (%p2684_p4), [#allocation3], %s2170_s29 }
  0x20   : > { %s184_s6 = sadd.s32 (%p2684_p4), %s2172_s30, %s2171_s25 }
  0x21   : > { %s2173_s8 = sshll.u32 (%p2684_p4), %s184_s6, 2 }
  0x22   : > { %s186_s7 = scalar_lea.vmem (%p2684_p4), %s3052_s0, %s2173_s8 }
  0x23   : > { %v199_v0 = vld [vmem:[%s186_s7] sm:$0xff] (%p2684_p4)  ;;  %v201_v1 = vld [vmem:[%s186_s7 + $0x8] sm:$0xff] (%p2684_p4) }
  0x24   : > { %v203_v2 = vld [vmem:[%s186_s7 + $0x40] sm:$0xff]  ;;  %200 = vst [vmem:[%s181_s10] sm:$0xff] %v199_v0  ;;  %202 = vst [vmem:[%s181_s10 + $0x8] sm:$0xff] %v201_v1  ;;  %v205_v3 = vld [vmem:[%s186_s7 + $0x48] sm:$0xff] }
  0x25   : > { %204 = vst [vmem:[%s181_s10 + $0x10] sm:$0xff] %v203_v2  ;;  %206 = vst [vmem:[%s181_s10 + $0x18] sm:$0xff] %v205_v3 }
  0x26 PF: > { %212 = sbr.rel (!%p2697_p9) target bundleno = 47 (0x2f), region = 51  ;;  %s214_s5 = sand.u32 (%p2697_p9), 1, %s2539_s16  }
  0x27   : > { %s2175_s24 = sshll.u32 (%p2697_p9), %s2559_s21, 2  ;;  %s2174_s25 = sshll.u32 (%p2697_p9), %s214_s5, 5 }
  0x28   : > { %s2176_s30 = sshll.u32 (%p2697_p9), %s2563_s22, 5  ;;  %s216_s7 = scalar_lea.vmem (%p2697_p9), [#allocation4], %s2174_s25 }
  0x29   : > { %s2093_s6 = sadd.s32 (%p2697_p9), %s2176_s30, %s2175_s24 }
  0x2a   : > { %s2177_s8 = sshll.u32 (%p2697_p9), %s2093_s6, 2 }
  0x2b   : > { %s2095_s27 = scalar_lea.vmem (%p2697_p9), %s3053_s1, %s2177_s8 }
  0x2c   : > { %v2178_v4 = vld [vmem:[%s2095_s27 + $0x10] sm:$0xff] (%p2697_p9)  ;;  %v2179_v5 = vld [vmem:[%s2095_s27 + $0x18] sm:$0xff] (%p2697_p9) }
  0x2d   : > { %v2180_v6 = vld [vmem:[%s2095_s27 + $0x50] sm:$0xff]  ;;  %236 = vst [vmem:[%s216_s7] sm:$0xff] %v2178_v4  ;;  %238 = vst [vmem:[%s216_s7 + $0x8] sm:$0xff] %v2179_v5  ;;  %v2181_v7 = vld [vmem:[%s2095_s27 + $0x58] sm:$0xff] }
  0x2e   : > { %240 = vst [vmem:[%s216_s7 + $0x10] sm:$0xff] %v2180_v6  ;;  %242 = vst [vmem:[%s216_s7 + $0x18] sm:$0xff] %v2181_v7 }
  0x2f PF: > { %p2182_p12 = scmp.ge.s32.totalorder %s2567_s23, 1  ;;  %p247_p13 = scmp.lt.s32.totalorder %s2567_s23, 7 }
  0x31   : > { %p248_p0 = pnand %p2182_p12, %p247_p13 }
  0x32   : > { %s254_s11 = sand.u32 (!%p248_p0), 1, %s2543_s17   ;;  %s261_s5 = sand.u32 (!%p248_p0), 1, %s2535_s15   ;;  %vm350_vm0 = vcmask (!%p248_p0), 1039360   ;;  %vm373_vm1 = vcmask (!%p248_p0), 1048568   ;;  %vm403_vm2 = vcmask (!%p248_p0), 1031168   ;;  %vm426_vm3 = vcmask (!%p248_p0), 1048560  }
  0x33   : > { %251 = sbr.rel (%p248_p0) target bundleno = 663 (0x297), region = 74  ;;  %s2183_s10 = sshll.u32 (!%p248_p0), %s254_s11, 5  ;;  %vm456_vm4 = vcmask (!%p248_p0), 949248   ;;  %vm479_vm5 = vcmask (!%p248_p0), 1048480   ;;  %vm509_vm6 = vcmask (!%p248_p0), 941056   ;;  %vm532_vm7 = vcmask (!%p248_p0), 1048472  }
  0x34   : > { %s2184_s24 = sshll.u32 (!%p248_p0), %s261_s5, 5  ;;  %s2737_s25 = scalar_lea.vmem (!%p248_p0), [#allocation3], %s2183_s10  ;;  %v2493_v60 = vld [vmem:[%s3054_s2 + $0x4] ss:$16 sps:$4 sm:$0xff] (!%p248_p0)   ;;  %vm562_vm8 = vcmask (!%p248_p0), 932864   ;;  %vm585_vm9 = vcmask (!%p248_p0), 1048464  }
  0x35   : > { %v2740_v8 = vld [vmem:[%s2737_s25 + $0xc] ss:$16 sps:$4 sm:$0xff] (!%p248_p0)   ;;  %v2743_v9 = vld [vmem:[%s2737_s25 + $0x8] ss:$16 sps:$4 sm:$0xff] (!%p248_p0)   ;;  %s2569_s30 = smov (!%p248_p0), 127   ;;  %s2748_s6 = scalar_lea.vmem (!%p248_p0), [#allocation4], %s2184_s24  ;;  %1879 = vmatprep.mubr.bf16.mxu0 (!%p248_p0), %v2493_v60  ;;  %1965 = vmatprep.mubr.bf16.mxu1 (!%p248_p0), %v2493_v60 }
  0x36   : > { %348 = vrot.lane.b32.xlu1 (!%p248_p0), %v2740_v8, %s2569_s30  ;;  %v2452_v10 = vld [vmem:[%s2737_s25 + $0x4] ss:$16 sps:$4 sm:$0xff] (!%p248_p0)   ;;  %v2454_v11 = vld [vmem:[%s2737_s25] ss:$16 sps:$4 sm:$0xff] (!%p248_p0)   ;;  %1933 = vmatprep.subr.bf16.mxu1 (!%p248_p0), %v2740_v8  ;;  %s2570_s15 = smov (!%p248_p0), 126   ;;  %s2571_s8 = smov (!%p248_p0), 116  }
  0x37   : > { %1934 = vmatpush1.bf16.msra.mxu1 (!%p248_p0), %v2743_v9  ;;  %344 = vrot.lane.b32.xlu0 (!%p248_p0), %v2452_v10, %s2569_s30  ;;  %v2455_v12 = vld [vmem:[%s2748_s6] ss:$16 sps:$4 sm:$0xff] (!%p248_p0)   ;;  %s2572_s9 = smov (!%p248_p0), 115   ;;  %s2573_s29 = smov (!%p248_p0), 114   ;;  %v2465_v20 = vld [vmem:[%s2737_s25 + $0xc] ss:$16 sps:$4 sm:$0xff] (!%p248_p0)  }
  0x38   : > { %1847 = vmatprep.subr.bf16.mxu0 (!%p248_p0), %v2452_v10  ;;  %v2456_v13 = vld [vmem:[%s2748_s6] ss:$16 sps:$4 sm:$0xff] (!%p248_p0)   ;;  %s2574_s27 = smov (!%p248_p0), 104   ;;  %s2575_s7 = smov (!%p248_p0), 103   ;;  %v2779_v23 = vld [vmem:[%s2737_s25 + $0x8] ss:$16 sps:$4 sm:$0xff] (!%p248_p0)  }
  0x39   : > { %1848 = vmatpush1.bf16.msra.mxu0 (!%p248_p0), %v2454_v11  ;;  %v2457_v14 = vld [vmem:[%s2748_s6] ss:$16 sps:$4 sm:$0xff] (!%p248_p0)   ;;  %s2576_s10 = smov (!%p248_p0), 102   ;;  %s2577_s5 = smov (!%p248_p0), 112   ;;  %v2789_v26 = vld [vmem:[%s2737_s25 + $0x4] ss:$16 sps:$4 sm:$0xff] (!%p248_p0)  }
  0x3a   : > { %342 = vrot.lane.b32.xlu1 %v2454_v11, %s2569_s30  ;;  %v2458_v15 = vld [vmem:[%s2748_s6] ss:$16 sps:$4 sm:$0xff]   ;;  %s2578_s24 = smov 111   ;;  %v2469_v27 = vld [vmem:[%s2737_s25 + $0xc] ss:$16 sps:$4 sm:$0xff]   ;;  %vm615_vm10 = vcmask 850944  }
  0x3b   : > { %346 = vrot.lane.b32.xlu0 %v2743_v9, %s2569_s30  ;;  %v2459_v16 = vld [vmem:[%s2748_s6] ss:$16 sps:$4 sm:$0xff]   ;;  %v2470_v28 = vld [vmem:[%s2737_s25 + $0xc] ss:$16 sps:$4 sm:$0xff]   ;;  %vm638_vm11 = vcmask 1048384   ;;  %vm668_vm12 = vcmask 842752  }
  0x3c   : > { %v2460_v17 = vld [vmem:[%s2748_s6] ss:$16 sps:$4 sm:$0xff]   ;;  %v2471_v29 = vld [vmem:[%s2737_s25 + $0xc] ss:$16 sps:$4 sm:$0xff]   ;;  %vm691_vm13 = vcmask 1048376   ;;  %vm721_vm14 = vcmask 834560  }
  0x3d   : > { %v2461_v18 = vld [vmem:[%s2748_s6] ss:$16 sps:$4 sm:$0xff]   ;;  %v2472_v32 = vld [vmem:[%s2737_s25 + $0xc] ss:$16 sps:$4 sm:$0xff]   ;;  %vm744_vm15 = vcmask 1048368   ;;  %s2327_s17 = sshll.u32 (%p2704_p10), %s2551_s19, 2 }
  0x3e   : > { %397 = vrot.lane.b32.xlu1 %v2452_v10, %s2570_s15  ;;  %v2462_v19 = vld [vmem:[%s2748_s6] ss:$16 sps:$4 sm:$0xff]   ;;  %v2473_v45 = vld [vmem:[%s2737_s25 + $0xc] ss:$16 sps:$4 sm:$0xff]  }
  0x3f   : > { %370 = vrot.lane.b32.xlu0 %v2455_v12, %s2569_s30  ;;  %v779_v21 = vld [vmem:[%s2748_s6] sm:$0xff]  ;;  %v780_v22 = vld [vmem:[%s2748_s6 + $0x10] sm:$0xff]  ;;  %s2579_s30 = smov 110   ;;  %v2474_v51 = vld [vmem:[%s2737_s25 + $0xc] ss:$16 sps:$4 sm:$0xff]  }
  0x40   : > { %v2781_v24 = vcombine.high %v779_v21, %v780_v22  ;;  %v2784_v25 = vcombine.low %v779_v21, %v780_v22  ;;  %v2475_v2 = vld [vmem:[%s2737_s25 + $0xc] ss:$16 sps:$4 sm:$0xff]   ;;  %v2477_v21 = vld [vmem:[%s2748_s6 + $0x8] ss:$16 sps:$4 sm:$0xff]  }
  0x42   : > { %401 = vrot.lane.b32.xlu1 %v2740_v8, %s2570_s15 }
  0x43   : > { %399 = vrot.lane.b32.xlu0 %v2743_v9, %s2570_s15 }
  0x46   : > { %423 = vrot.lane.b32.xlu1 %v2456_v13, %s2570_s15 }
  0x47   : > { %395 = vrot.lane.b32.xlu0 %v2454_v11, %s2570_s15  ;;  %s2580_s15 = smov 100  }
  0x4a   : > { %452 = vrot.lane.b32.xlu1 %v2743_v9, %s2571_s8 }
  0x4b   : > { %450 = vrot.lane.b32.xlu0 %v2452_v10, %s2571_s8 }
  0x4e   : > { %448 = vrot.lane.b32.xlu1 %v2454_v11, %s2571_s8 }
  0x4f   : > { %454 = vrot.lane.b32.xlu0 %v2740_v8, %s2571_s8 }
  0x52   : > { %503 = vrot.lane.b32.xlu1 %v2452_v10, %s2572_s9 }
  0x53   : > { %476 = vrot.lane.b32.xlu0 %v2457_v14, %s2571_s8  ;;  %s2581_s8 = smov 99  }
  0x56   : > { %507 = vrot.lane.b32.xlu1 %v2740_v8, %s2572_s9 }
  0x57   : > { %505 = vrot.lane.b32.xlu0 %v2743_v9, %s2572_s9 }
  0x5a   : > { %529 = vrot.lane.b32.xlu1 %v2458_v15, %s2572_s9 }
  0x5b   : > { %501 = vrot.lane.b32.xlu0 %v2454_v11, %s2572_s9  ;;  %s2582_s9 = smov 98  }
  0x5e   : > { %558 = vrot.lane.b32.xlu1 %v2743_v9, %s2573_s29 }
  0x5f   : > { %556 = vrot.lane.b32.xlu0 %v2452_v10, %s2573_s29 }
  0x62   : > { %554 = vrot.lane.b32.xlu1 %v2454_v11, %s2573_s29 }
  0x63   : > { %560 = vrot.lane.b32.xlu0 %v2740_v8, %s2573_s29 }
  0x66   : > { %609 = vrot.lane.b32.xlu1 %v2452_v10, %s2574_s27 }
  0x67   : > { %582 = vrot.lane.b32.xlu0 %v2459_v16, %s2573_s29  ;;  %s2583_s29 = smov 88  }
  0x6a   : > { %613 = vrot.lane.b32.xlu1 %v2740_v8, %s2574_s27 }
  0x6b   : > { %611 = vrot.lane.b32.xlu0 %v2743_v9, %s2574_s27 }
  0x6e   : > { %635 = vrot.lane.b32.xlu1 %v2460_v17, %s2574_s27 }
  0x6f   : > { %607 = vrot.lane.b32.xlu0 %v2454_v11, %s2574_s27  ;;  %s2593_s27 = smov 71  }
  0x72   : > { %664 = vrot.lane.b32.xlu1 %v2743_v9, %s2575_s7 }
  0x73   : > { %662 = vrot.lane.b32.xlu0 %v2452_v10, %s2575_s7 }
  0x76   : > { %660 = vrot.lane.b32.xlu1 %v2454_v11, %s2575_s7 }
  0x77   : > { %666 = vrot.lane.b32.xlu0 %v2740_v8, %s2575_s7 }
  0x7a   : > { %715 = vrot.lane.b32.xlu1 %v2452_v10, %s2576_s10  ;;  %v2476_v10 = vld [vmem:[%s2737_s25 + $0xc] ss:$16 sps:$4 sm:$0xff]  }
  0x7b   : > { %688 = vrot.lane.b32.xlu0 %v2461_v18, %s2575_s7  ;;  %s2594_s7 = smov 70  }
  0x7e   : > { %719 = vrot.lane.b32.xlu1 %v2740_v8, %s2576_s10 }
  0x7f   : > { %717 = vrot.lane.b32.xlu0 %v2743_v9, %s2576_s10 }
  0x82   : > { %741 = vrot.lane.b32.xlu1 %v2462_v19, %s2576_s10 }
  0x83   : > { %713 = vrot.lane.b32.xlu0 %v2454_v11, %s2576_s10  ;;  %s2584_s10 = smov 87  }
  0x86   : > { %767 = vrot.lane.b32.xlu1 %v2465_v20, %s2577_s5 }
  0x87   : > { %765 = vrot.lane.b32.xlu0 %v2779_v23, %s2577_s5 }
  0x8a   : > { %791 = vrot.lane.b32.xlu1 %v2781_v24, %s2577_s5 }
  0x8b   : > { %789 = vrot.lane.b32.xlu0 %v2784_v25, %s2577_s5 }
  0x8e   : > { %818 = vrot.lane.b32.xlu1 %v2779_v23, %s2578_s24 }
  0x8f   : > { %763 = vrot.lane.b32.xlu0 %v2789_v26, %s2577_s5  ;;  %s2585_s5 = smov 86  }
  0x92   : > { %842 = vrot.lane.b32.xlu1 %v2784_v25, %s2578_s24 }
  0x93   : > { %820 = vrot.lane.b32.xlu0 %v2469_v27, %s2578_s24 }
  0x96   : > { %816 = vrot.lane.b32.xlu1 %v2789_v26, %s2578_s24 }
  0x97   : > { %844 = vrot.lane.b32.xlu0 %v2781_v24, %s2578_s24  ;;  %s2586_s24 = smov 96  }
  0x9a   : > { %873 = vrot.lane.b32.xlu1 %v2470_v28, %s2579_s30 }
  0x9b   : > { %871 = vrot.lane.b32.xlu0 %v2779_v23, %s2579_s30 }
  0x9e   : > { %897 = vrot.lane.b32.xlu1 %v2781_v24, %s2579_s30 }
  0x9f   : > { %895 = vrot.lane.b32.xlu0 %v2784_v25, %s2579_s30 }
  0xa2   : > { %924 = vrot.lane.b32.xlu1 %v2779_v23, %s2580_s15 }
  0xa3   : > { %869 = vrot.lane.b32.xlu0 %v2789_v26, %s2579_s30  ;;  %s2587_s30 = smov 95  }
  0xa6   : > { %948 = vrot.lane.b32.xlu1 %v2784_v25, %s2580_s15 }
  0xa7   : > { %926 = vrot.lane.b32.xlu0 %v2471_v29, %s2580_s15 }
  0xa8   : > { %v349_v30 = vpop.permute.xlu1 %348 }
  0xa9   : > { %362 = vst.msk [vmem:[#allocation2 + $0x38] sm:$0xff] %vm350_vm0, %v349_v30  ;;  %v345_v31 = vpop.permute.xlu0 %344 }
  0xaa   : > { %922 = vrot.lane.b32.xlu1 %v2789_v26, %s2580_s15 }
  0xab   : > { %950 = vrot.lane.b32.xlu0 %v2781_v24, %s2580_s15  ;;  %s2588_s15 = smov 94  }
  0xac   : > { %v343_v33 = vpop.permute.xlu1 %342 }
  0xad   : > { %v351_v34 = vsel %vm350_vm0, %v343_v33, %v345_v31  ;;  %v347_v35 = vpop.permute.xlu0 %346 }
  0xae   : > { %979 = vrot.lane.b32.xlu1 %v2472_v32, %s2581_s8  ;;  %v352_v36 = vsel %vm350_vm0, %v345_v31, %v347_v35  ;;  %v353_v37 = vsel %vm350_vm0, %v347_v35, %v349_v30  ;;  %vm769_vm0 = vcmask 916480  }
  0xaf   : > { %977 = vrot.lane.b32.xlu0 %v2779_v23, %s2581_s8  ;;  %1849 = vmatprep.subr.bf16.mxu0 %v352_v36 }
  0xb0   : > { %v398_v38 = vpop.permute.xlu1 %397  ;;  %1850 = vmatpush1.bf16.msra.mxu0 %v351_v34 }
  0xb1   : > { %v371_v39 = vpop.permute.xlu0 %370 }
  0xb2   : > { %1003 = vrot.lane.b32.xlu1 %v2781_v24, %s2581_s8  ;;  %374 = vst.msk [vmem:[#allocation2 + $0x38] sm:$0xff] %vm373_vm1, %v371_v39  ;;  %v2478_v39 = vld [vmem:[%s2748_s6 + $0x8] ss:$16 sps:$4 sm:$0xff]   ;;  %vm796_vm1 = vcmask 1048448  }
  0xb3   : > { %1001 = vrot.lane.b32.xlu0 %v2784_v25, %s2581_s8 }
  0xb4   : > { %v402_v40 = vpop.permute.xlu1 %401 }
  0xb5   : > { %415 = vst.msk [vmem:[#allocation2 + $0x58] sm:$0xff] %vm403_vm2, %v402_v40  ;;  %v400_v41 = vpop.permute.xlu0 %399 }
  0xb6   : > { %1030 = vrot.lane.b32.xlu1 %v2779_v23, %s2582_s9  ;;  %v405_v42 = vsel %vm403_vm2, %v398_v38, %v400_v41  ;;  %v406_v43 = vsel %vm403_vm2, %v400_v41, %v402_v40 }
  0xb7   : > { %975 = vrot.lane.b32.xlu0 %v2789_v26, %s2581_s8  ;;  %1851 = vmatprep.subr.bf16.mxu0 %v405_v42  ;;  %s2589_s8 = smov 84  }
  0xb8   : > { %v424_v44 = vpop.permute.xlu1 %423 }
  0xb9   : > { %427 = vst.msk [vmem:[#allocation2 + $0x58] sm:$0xff] %vm426_vm3, %v424_v44  ;;  %v396_v46 = vpop.permute.xlu0 %395  ;;  %v1711_v47 = vld [vmem:[#allocation2 + $0x38] sm:$0xff]  ;;  %vm849_vm3 = vcmask 1048440  }
  0xba   : > { %1054 = vrot.lane.b32.xlu1 %v2784_v25, %s2582_s9  ;;  %v404_v48 = vsel %vm403_vm2, %v396_v46, %v398_v38  ;;  %1935 = vmatprep.subr.bf16.mxu1 %v1711_v47  ;;  %vm822_vm2 = vcmask 908288  }
  0xbb   : > { %1032 = vrot.lane.b32.xlu0 %v2473_v45, %s2582_s9  ;;  %1936 = vmatpush1.bf16.msra.mxu1 %v353_v37 }
  0xbc   : > { %v453_v49 = vpop.permute.xlu1 %452  ;;  %1852 = vmatpush1.bf16.msra.mxu0 %v404_v48 }
  0xbd   : > { %v451_v50 = vpop.permute.xlu0 %450 }
  0xbe   : > { %1028 = vrot.lane.b32.xlu1 %v2789_v26, %s2582_s9  ;;  %v458_v52 = vsel %vm456_vm4, %v451_v50, %v453_v49 }
  0xbf   : > { %1056 = vrot.lane.b32.xlu0 %v2781_v24, %s2582_s9  ;;  %1853 = vmatprep.subr.bf16.mxu0 %v458_v52  ;;  %s2591_s9 = smov 82  }
  0xc0   : > { %v449_v53 = vpop.permute.xlu1 %448  ;;  %v1715_v54 = vld [vmem:[#allocation2 + $0x58] sm:$0xff] }
  0xc1   : > { %v457_v55 = vsel %vm456_vm4, %v449_v53, %v451_v50  ;;  %1937 = vmatprep.subr.bf16.mxu1 %v1715_v54  ;;  %v455_v56 = vpop.permute.xlu0 %454  ;;  %v2881_v54 = vld [vmem:[%s2737_s25 + $0xc] ss:$16 sps:$4 sm:$0xff]  }
  0xc2   : > { %1085 = vrot.lane.b32.xlu1 %v2474_v51, %s2583_s29  ;;  %1938 = vmatpush1.bf16.msra.mxu1 %v406_v43  ;;  %v459_v57 = vsel %vm456_vm4, %v453_v49, %v455_v56  ;;  %468 = vst.msk [vmem:[#allocation2 + $0x78] sm:$0xff] %vm456_vm4, %v455_v56  ;;  %v2479_v43 = vld [vmem:[%s2748_s6 + $0x8] ss:$16 sps:$4 sm:$0xff]   ;;  %vm875_vm4 = vcmask 900096  }
  0xc3   : > { %1854 = vmatpush1.bf16.msra.mxu0 %v457_v55  ;;  %1083 = vrot.lane.b32.xlu0 %v2779_v23, %s2583_s29  ;;  %v2885_v56 = vld [vmem:[%s2737_s25 + $0x8] ss:$16 sps:$4 sm:$0xff]   ;;  %s2590_s25 = smov 83  }
  0xc4   : > { %v504_v58 = vpop.permute.xlu1 %503 }
  0xc5   : > { %v477_v59 = vpop.permute.xlu0 %476 }
  0xc6   : > { %1109 = vrot.lane.b32.xlu1 %v2781_v24, %s2583_s29  ;;  %480 = vst.msk [vmem:[#allocation2 + $0x78] sm:$0xff] %vm479_vm5, %v477_v59  ;;  %vm902_vm5 = vcmask 1048432  }
  0xc7   : > { %1107 = vrot.lane.b32.xlu0 %v2784_v25, %s2583_s29 }
  0xc8   : > { %v508_v61 = vpop.permute.xlu1 %507 }
  0xc9   : > { %521 = vst.msk [vmem:[#allocation2 + $0x98] sm:$0xff] %vm509_vm6, %v508_v61  ;;  %v506_v62 = vpop.permute.xlu0 %505 }
  0xca   : > { %1136 = vrot.lane.b32.xlu1 %v2779_v23, %s2584_s10  ;;  %v511_v63 = vsel %vm509_vm6, %v504_v58, %v506_v62  ;;  %v512_v0 = vsel %vm509_vm6, %v506_v62, %v508_v61 }
  0xcb   : > { %1081 = vrot.lane.b32.xlu0 %v2789_v26, %s2583_s29  ;;  %1855 = vmatprep.subr.bf16.mxu0 %v511_v63  ;;  %s2592_s29 = smov 72  }
  0xcc   : > { %v530_v1 = vpop.permute.xlu1 %529 }
  0xcd   : > { %533 = vst.msk [vmem:[#allocation2 + $0x98] sm:$0xff] %vm532_vm7, %v530_v1  ;;  %v502_v3 = vpop.permute.xlu0 %501  ;;  %v1719_v4 = vld [vmem:[#allocation2 + $0x78] sm:$0xff]  ;;  %vm955_vm7 = vcmask 1048352  }
  0xce   : > { %1160 = vrot.lane.b32.xlu1 %v2784_v25, %s2584_s10  ;;  %v510_v5 = vsel %vm509_vm6, %v502_v3, %v504_v58  ;;  %1939 = vmatprep.subr.bf16.mxu1 %v1719_v4  ;;  %v2482_v58 = vld [vmem:[%s2748_s6 + $0x8] ss:$16 sps:$4 sm:$0xff]   ;;  %vm928_vm6 = vcmask 818176  }
  0xcf   : > { %1138 = vrot.lane.b32.xlu0 %v2475_v2, %s2584_s10  ;;  %1940 = vmatpush1.bf16.msra.mxu1 %v459_v57 }
  0xd0   : > { %v559_v6 = vpop.permute.xlu1 %558  ;;  %1856 = vmatpush1.bf16.msra.mxu0 %v510_v5 }
  0xd1   : > { %v557_v7 = vpop.permute.xlu0 %556 }
  0xd2   : > { %1134 = vrot.lane.b32.xlu1 %v2789_v26, %s2584_s10  ;;  %v564_v11 = vsel %vm562_vm8, %v557_v7, %v559_v6 }
  0xd3   : > { %1162 = vrot.lane.b32.xlu0 %v2781_v24, %s2584_s10  ;;  %1857 = vmatprep.subr.bf16.mxu0 %v564_v11 }
  0xd4   : > { %v555_v12 = vpop.permute.xlu1 %554  ;;  %v1723_v13 = vld [vmem:[#allocation2 + $0x98] sm:$0xff] }
  0xd5   : > { %v563_v14 = vsel %vm562_vm8, %v555_v12, %v557_v7  ;;  %1941 = vmatprep.subr.bf16.mxu1 %v1723_v13  ;;  %v561_v15 = vpop.permute.xlu0 %560 }
  0xd6   : > { %1191 = vrot.lane.b32.xlu1 %v2476_v10, %s2585_s5  ;;  %1942 = vmatpush1.bf16.msra.mxu1 %v512_v0  ;;  %v565_v16 = vsel %vm562_vm8, %v559_v6, %v561_v15  ;;  %574 = vst.msk [vmem:[#allocation2 + $0xb8] sm:$0xff] %vm562_vm8, %v561_v15  ;;  %v2484_v0 = vld [vmem:[%s2748_s6 + $0x8] ss:$16 sps:$4 sm:$0xff]   ;;  %vm981_vm8 = vcmask 809984  }
  0xd7   : > { %1858 = vmatpush1.bf16.msra.mxu0 %v563_v14  ;;  %1189 = vrot.lane.b32.xlu0 %v2779_v23, %s2585_s5 }
  0xd8   : > { %v610_v17 = vpop.permute.xlu1 %609 }
  0xd9   : > { %v583_v18 = vpop.permute.xlu0 %582 }
  0xda   : > { %1215 = vrot.lane.b32.xlu1 %v2781_v24, %s2585_s5  ;;  %586 = vst.msk [vmem:[#allocation2 + $0xb8] sm:$0xff] %vm585_vm9, %v583_v18  ;;  %vm1008_vm9 = vcmask 1048344  }
  0xdb   : > { %1213 = vrot.lane.b32.xlu0 %v2784_v25, %s2585_s5 }
  0xdc   : > { %v614_v19 = vpop.permute.xlu1 %613 }
  0xdd   : > { %627 = vst.msk [vmem:[#allocation2 + $0xd8] sm:$0xff] %vm615_vm10, %v614_v19  ;;  %v612_v20 = vpop.permute.xlu0 %611 }
  0xde   : > { %1235 = vrot.lane.b32.xlu1 %v2740_v8, %s2586_s24  ;;  %v617_v22 = vsel %vm615_vm10, %v610_v17, %v612_v20  ;;  %v618_v23 = vsel %vm615_vm10, %v612_v20, %v614_v19 }
  0xdf   : > { %1187 = vrot.lane.b32.xlu0 %v2789_v26, %s2585_s5  ;;  %1859 = vmatprep.subr.bf16.mxu0 %v617_v22 }
  0xe0   : > { %v636_v27 = vpop.permute.xlu1 %635 }
  0xe1   : > { %639 = vst.msk [vmem:[#allocation2 + $0xd8] sm:$0xff] %vm638_vm11, %v636_v27  ;;  %v608_v28 = vpop.permute.xlu0 %607  ;;  %v1727_v29 = vld [vmem:[#allocation2 + $0xb8] sm:$0xff]  ;;  %v1564_v27 = vld [vmem:[%s2748_s6 + $0x10] sm:$0xff]  ;;  %vm1061_vm11 = vcmask 1048336  }
  0xe2   : > { %1265 = vrot.lane.b32.xlu1 %v2477_v21, %s2586_s24  ;;  %v616_v30 = vsel %vm615_vm10, %v608_v28, %v610_v17  ;;  %1943 = vmatprep.subr.bf16.mxu1 %v1727_v29  ;;  %v2488_v21 = vld [vmem:[%s2748_s6 + $0x8] ss:$16 sps:$4 sm:$0xff]   ;;  %v2486_v29 = vld [vmem:[%s2748_s6 + $0x4] ss:$16 sps:$4 sm:$0xff]   ;;  %vm1034_vm10 = vcmask 801792  }
  0xe3   : > { %1263 = vrot.lane.b32.xlu0 %v2781_v24, %s2586_s24  ;;  %1944 = vmatpush1.bf16.msra.mxu1 %v565_v16  ;;  %v2485_v16 = vld [vmem:[%s2748_s6 + $0x8] ss:$16 sps:$4 sm:$0xff]  }
  0xe4   : > { %v665_v31 = vpop.permute.xlu1 %664  ;;  %1860 = vmatpush1.bf16.msra.mxu0 %v616_v30 }
  0xe5   : > { %v663_v32 = vpop.permute.xlu0 %662 }
  0xe6   : > { %1261 = vrot.lane.b32.xlu1 %v2784_v25, %s2586_s24  ;;  %v670_v26 = vsel %vm668_vm12, %v663_v32, %v665_v31 }
  0xe7   : > { %1233 = vrot.lane.b32.xlu0 %v2743_v9, %s2586_s24  ;;  %1861 = vmatprep.subr.bf16.mxu0 %v670_v26 }
  0xe8   : > { %v661_v33 = vpop.permute.xlu1 %660  ;;  %v1731_v34 = vld [vmem:[#allocation2 + $0xd8] sm:$0xff] }
  0xe9   : > { %v669_v35 = vsel %vm668_vm12, %v661_v33, %v663_v32  ;;  %1945 = vmatprep.subr.bf16.mxu1 %v1731_v34  ;;  %v667_v36 = vpop.permute.xlu0 %666 }
  0xea   : > { %1316 = vrot.lane.b32.xlu1 %v2781_v24, %s2587_s30  ;;  %1946 = vmatpush1.bf16.msra.mxu1 %v618_v23  ;;  %v671_v37 = vsel %vm668_vm12, %v665_v31, %v667_v36  ;;  %680 = vst.msk [vmem:[#allocation2 + $0xf8] sm:$0xff] %vm668_vm12, %v667_v36  ;;  %v1562_v23 = vld [vmem:[%s2748_s6] sm:$0xff]  ;;  %vm1087_vm12 = vcmask 719872  }
  0xeb   : > { %1862 = vmatpush1.bf16.msra.mxu0 %v669_v35  ;;  %1288 = vrot.lane.b32.xlu0 %v2740_v8, %s2587_s30  ;;  %v2307_v32 = vcombine.low %v1562_v23, %v1564_v27 }
  0xec   : > { %v716_v38 = vpop.permute.xlu1 %715 }
  0xed   : > { %v689_v40 = vpop.permute.xlu0 %688 }
  0xee   : > { %1286 = vrot.lane.b32.xlu1 %v2743_v9, %s2587_s30  ;;  %692 = vst.msk [vmem:[#allocation2 + $0xf8] sm:$0xff] %vm691_vm13, %v689_v40  ;;  %v2489_v40 = vld [vmem:[%s2748_s6 + $0x8] ss:$16 sps:$4 sm:$0xff]   ;;  %vm1114_vm13 = vcmask 1048256  }
  0xef   : > { %1318 = vrot.lane.b32.xlu0 %v2478_v39, %s2587_s30 }
  0xf0   : > { %v720_v41 = vpop.permute.xlu1 %719 }
  0xf1   : > { %733 = vst.msk [vmem:[#allocation2 + $0x118] sm:$0xff] %vm721_vm14, %v720_v41  ;;  %v718_v42 = vpop.permute.xlu0 %717 }
  0xf2   : > { %1341 = vrot.lane.b32.xlu1 %v2740_v8, %s2588_s15  ;;  %v723_v44 = vsel %vm721_vm14, %v716_v38, %v718_v42  ;;  %v724_v45 = vsel %vm721_vm14, %v718_v42, %v720_v41 }
  0xf3   : > { %1314 = vrot.lane.b32.xlu0 %v2784_v25, %s2587_s30  ;;  %1863 = vmatprep.subr.bf16.mxu0 %v723_v44 }
  0xf4   : > { %v742_v46 = vpop.permute.xlu1 %741 }
  0xf5   : > { %745 = vst.msk [vmem:[#allocation2 + $0x118] sm:$0xff] %vm744_vm15, %v742_v46  ;;  %v714_v47 = vpop.permute.xlu0 %713  ;;  %v1735_v48 = vld [vmem:[#allocation2 + $0xf8] sm:$0xff]  ;;  %vm1167_vm15 = vcmask 1048248  }
  0xf6   : > { %1371 = vrot.lane.b32.xlu1 %v2479_v43, %s2588_s15  ;;  %v722_v49 = vsel %vm721_vm14, %v714_v47, %v716_v38  ;;  %1947 = vmatprep.subr.bf16.mxu1 %v1735_v48  ;;  %v2490_v46 = vld [vmem:[%s2748_s6 + $0x8] ss:$16 sps:$4 sm:$0xff]   ;;  %vm1140_vm14 = vcmask 711680  }
  0xf7   : > { %1369 = vrot.lane.b32.xlu0 %v2781_v24, %s2588_s15  ;;  %1948 = vmatpush1.bf16.msra.mxu1 %v671_v37 }
  0xf8   : > { %v768_v8 = vpop.permute.xlu1 %767  ;;  %1864 = vmatpush1.bf16.msra.mxu0 %v722_v49 }
  0xf9   : > { %778 = vst.msk [vmem:[#allocation2 + $0x130] sm:$0xff] %vm769_vm0, %v768_v8  ;;  %v766_v50 = vpop.permute.xlu0 %765 }
  0xfa   : > { %1367 = vrot.lane.b32.xlu1 %v2784_v25, %s2588_s15  ;;  %v771_v51 = vsel %vm769_vm0, %v766_v50, %v768_v8 }
  0xfb   : > { %1339 = vrot.lane.b32.xlu0 %v2743_v9, %s2588_s15  ;;  %1865 = vmatprep.subr.bf16.mxu0 %v771_v51 }
  0xfc   : > { %v792_v52 = vpop.permute.xlu1 %791  ;;  %v1739_v53 = vld [vmem:[#allocation2 + $0x118] sm:$0xff] }
  0xfd   : > { %1949 = vmatprep.subr.bf16.mxu1 %v1739_v53  ;;  %v790_v55 = vpop.permute.xlu0 %789  ;;  %v2595_v53 = vmov 0  }
  0xfe   : > { %1422 = vrot.lane.b32.xlu1 %v2781_v24, %s2589_s8  ;;  %1950 = vmatpush1.bf16.msra.mxu1 %v724_v45  ;;  %797 = vst.msk [vmem:[#allocation2 + $0x130] sm:$0xff] %vm796_vm1, %v790_v55  ;;  %v793_v57 = vsel %vm769_vm0, %v790_v55, %v792_v52  ;;  %vm1193_vm1 = vcmask 703488  }
  0xff   : > { %1394 = vrot.lane.b32.xlu0 %v2881_v54, %s2589_s8  ;;  %1951 = vmatprep.subr.bf16.mxu1 %v793_v57  ;;  %v1813_v57 = vld [vmem:[%s3055_s3 + $0x8] sm:$0xff] }
 0x100   : > { %v819_v9 = vpop.permute.xlu1 %818  ;;  %2447 = vset.pattern.permute.xlu0 %v2595_v53  ;;  %2448 = vset.pattern.permute.xlu1 %v2595_v53 }
 0x101   : > { %v764_v59 = vpop.permute.xlu0 %763 }
 0x102   : > { %1392 = vrot.lane.b32.xlu1 %v2885_v56, %s2589_s8  ;;  %v770_v60 = vsel %vm769_vm0, %v764_v59, %v766_v50  ;;  %vm1843_vm0 = vcmask 392192  }
 0x103   : > { %1424 = vrot.lane.b32.xlu0 %v2482_v58, %s2589_s8  ;;  %1866 = vmatpush1.bf16.msra.mxu0 %v770_v60  ;;  %v1812_v58 = vld [vmem:[%s3055_s3] sm:$0xff] }
 0x104   : > { %v843_v61 = vpop.permute.xlu1 %842 }
 0x105   : > { %v821_v62 = vpop.permute.xlu0 %820  ;;  %v1742_v63 = vld [vmem:[#allocation2 + $0x130] sm:$0xff] }
 0x106   : > { %1447 = vrot.lane.b32.xlu1 %v2881_v54, %s2590_s25  ;;  %v824_v1 = vsel %vm822_vm2, %v819_v9, %v821_v62  ;;  %831 = vst.msk [vmem:[#allocation2 + $0x150] sm:$0xff] %vm822_vm2, %v821_v62  ;;  %1952 = vmatpush1.bf16.msra.mxu1 %v1742_v63 }
 0x107   : > { %850 = vst.msk [vmem:[#allocation2 + $0x150] sm:$0xff] %vm849_vm3, %v843_v61  ;;  %1420 = vrot.lane.b32.xlu0 %v2784_v25, %s2589_s8  ;;  %1867 = vmatprep.subr.bf16.mxu0 %v824_v1  ;;  %vm1237_vm3 = vcmask 785408  }
 0x108   : > { %v817_v2 = vpop.permute.xlu1 %816 }
 0x109   : > { %v823_v3 = vsel %vm822_vm2, %v817_v2, %v819_v9  ;;  %v845_v4 = vpop.permute.xlu0 %844 }
 0x10a   : > { %1477 = vrot.lane.b32.xlu1 %v2484_v0, %s2590_s25  ;;  %1868 = vmatpush1.bf16.msra.mxu0 %v823_v3  ;;  %v846_v5 = vsel %vm822_vm2, %v843_v61, %v845_v4  ;;  %v2494_v3 = vld [vmem:[%s3054_s2 + $0xc] ss:$16 sps:$4 sm:$0xff]   ;;  %vm1220_vm2 = vcmask 1048240  }
 0x10b   : > { %1475 = vrot.lane.b32.xlu0 %v2781_v24, %s2590_s25  ;;  %1953 = vmatprep.subr.bf16.mxu1 %v846_v5 }
 0x10c   : > { %v874_v6 = vpop.permute.xlu1 %873 }
 0x10d   : > { %884 = vst.msk [vmem:[#allocation2 + $0x170] sm:$0xff] %vm875_vm4, %v874_v6  ;;  %v872_v7 = vpop.permute.xlu0 %871 }
 0x10e   : > { %1473 = vrot.lane.b32.xlu1 %v2784_v25, %s2590_s25  ;;  %v877_v10 = vsel %vm875_vm4, %v872_v7, %v874_v6  ;;  %v1746_v11 = vld [vmem:[#allocation2 + $0x150] sm:$0xff] }
 0x10f   : > { %1445 = vrot.lane.b32.xlu0 %v2885_v56, %s2590_s25  ;;  %1954 = vmatpush1.bf16.msra.mxu1 %v1746_v11 }
 0x110   : > { %v898_v12 = vpop.permute.xlu1 %897  ;;  %1869 = vmatprep.subr.bf16.mxu0 %v877_v10 }
 0x111   : > { %v896_v13 = vpop.permute.xlu0 %895 }
 0x112   : > { %1528 = vrot.lane.b32.xlu1 %v2781_v24, %s2591_s9  ;;  %903 = vst.msk [vmem:[#allocation2 + $0x170] sm:$0xff] %vm902_vm5, %v896_v13  ;;  %v899_v14 = vsel %vm875_vm4, %v896_v13, %v898_v12  ;;  %vm1290_vm5 = vcmask 777216  }
 0x113   : > { %1500 = vrot.lane.b32.xlu0 %v2881_v54, %s2591_s9  ;;  %1955 = vmatprep.subr.bf16.mxu1 %v899_v14 }
 0x114   : > { %v925_v15 = vpop.permute.xlu1 %924 }
 0x115   : > { %v870_v17 = vpop.permute.xlu0 %869 }
 0x116   : > { %1498 = vrot.lane.b32.xlu1 %v2885_v56, %s2591_s9  ;;  %v876_v18 = vsel %vm875_vm4, %v870_v17, %v872_v7  ;;  %vm1272_vm4 = vcmask 1048320  }
 0x117   : > { %1530 = vrot.lane.b32.xlu0 %v2485_v16, %s2591_s9  ;;  %1870 = vmatpush1.bf16.msra.mxu0 %v876_v18 }
 0x118   : > { %v949_v19 = vpop.permute.xlu1 %948 }
 0x119   : > { %v927_v24 = vpop.permute.xlu0 %926  ;;  %v1750_v20 = vld [vmem:[#allocation2 + $0x170] sm:$0xff] }
 0x11a   : > { %1553 = vrot.lane.b32.xlu1 %v2881_v54, %s2592_s29  ;;  %v930_v22 = vsel %vm928_vm6, %v925_v15, %v927_v24  ;;  %937 = vst.msk [vmem:[#allocation2 + $0x190] sm:$0xff] %vm928_vm6, %v927_v24  ;;  %1956 = vmatpush1.bf16.msra.mxu1 %v1750_v20 }
 0x11b   : > { %956 = vst.msk [vmem:[#allocation2 + $0x190] sm:$0xff] %vm955_vm7, %v949_v19  ;;  %1526 = vrot.lane.b32.xlu0 %v2784_v25, %s2591_s9  ;;  %1871 = vmatprep.subr.bf16.mxu0 %v930_v22  ;;  %vm1325_vm7 = vcmask 1048312  }
 0x11c   : > { %v923_v28 = vpop.permute.xlu1 %922 }
 0x11d   : > { %v929_v30 = vsel %vm928_vm6, %v923_v28, %v925_v15  ;;  %v951_v31 = vpop.permute.xlu0 %950 }
 0x11e   : > { %1583 = vrot.lane.b32.xlu1 %v2488_v21, %s2592_s29  ;;  %1872 = vmatpush1.bf16.msra.mxu0 %v929_v30  ;;  %v952_v26 = vsel %vm928_vm6, %v949_v19, %v951_v31  ;;  %vm1343_vm6 = vcmask 769024  }
 0x11f   : > { %1581 = vrot.lane.b32.xlu0 %v2486_v29, %s2592_s29  ;;  %1957 = vmatprep.subr.bf16.mxu1 %v952_v26 }
 0x120   : > { %v980_v33 = vpop.permute.xlu1 %979 }
 0x121   : > { %990 = vst.msk [vmem:[#allocation2 + $0x1b0] sm:$0xff] %vm981_vm8, %v980_v33  ;;  %v978_v34 = vpop.permute.xlu0 %977 }
 0x122   : > { %1579 = vrot.lane.b32.xlu1 %v2307_v32, %s2592_s29  ;;  %v983_v25 = vsel %vm981_vm8, %v978_v34, %v980_v33  ;;  %v1754_v35 = vld [vmem:[#allocation2 + $0x190] sm:$0xff] }
 0x123   : > { %1551 = vrot.lane.b32.xlu0 %v2885_v56, %s2592_s29  ;;  %1958 = vmatpush1.bf16.msra.mxu1 %v1754_v35 }
 0x124   : > { %v1004_v36 = vpop.permute.xlu1 %1003  ;;  %1873 = vmatprep.subr.bf16.mxu0 %v983_v25 }
 0x125   : > { %v1002_v37 = vpop.permute.xlu0 %1001 }
 0x126   : > { %1634 = vrot.lane.b32.xlu1 %v2486_v29, %s2593_s27  ;;  %1009 = vst.msk [vmem:[#allocation2 + $0x1b0] sm:$0xff] %vm1008_vm9, %v1002_v37  ;;  %v1005_v38 = vsel %vm981_vm8, %v1002_v37, %v1004_v36  ;;  %vm1396_vm9 = vcmask 687104  }
 0x127   : > { %1606 = vrot.lane.b32.xlu0 %v2881_v54, %s2593_s27  ;;  %1959 = vmatprep.subr.bf16.mxu1 %v1005_v38 }
 0x128   : > { %v1031_v39 = vpop.permute.xlu1 %1030 }
 0x129   : > { %v976_v41 = vpop.permute.xlu0 %975 }
 0x12a   : > { %1604 = vrot.lane.b32.xlu1 %v2885_v56, %s2593_s27  ;;  %v982_v42 = vsel %vm981_vm8, %v976_v41, %v978_v34  ;;  %vm1378_vm8 = vcmask 1048304  }
 0x12b   : > { %1636 = vrot.lane.b32.xlu0 %v2489_v40, %s2593_s27  ;;  %1874 = vmatpush1.bf16.msra.mxu0 %v982_v42 }
 0x12c   : > { %v1055_v43 = vpop.permute.xlu1 %1054 }
 0x12d   : > { %v1033_v44 = vpop.permute.xlu0 %1032  ;;  %v1758_v45 = vld [vmem:[#allocation2 + $0x1b0] sm:$0xff] }
 0x12e   : > { %1659 = vrot.lane.b32.xlu1 %v2881_v54, %s2594_s7  ;;  %v1036_v47 = vsel %vm1034_vm10, %v1031_v39, %v1033_v44  ;;  %1043 = vst.msk [vmem:[#allocation2 + $0x1d0] sm:$0xff] %vm1034_vm10, %v1033_v44  ;;  %1960 = vmatpush1.bf16.msra.mxu1 %v1758_v45 }
 0x12f   : > { %1062 = vst.msk [vmem:[#allocation2 + $0x1d0] sm:$0xff] %vm1061_vm11, %v1055_v43  ;;  %1632 = vrot.lane.b32.xlu0 %v2307_v32, %s2593_s27  ;;  %1875 = vmatprep.subr.bf16.mxu0 %v1036_v47  ;;  %vm1431_vm11 = vcmask 1048224   ;;  %s2185_s27 = sshll.u32 %s254_s11, 6  ;;  %s2347_s11 = smul.u32 (%p2704_p10), 24, %s2555_s20 }
 0x130   : > { %v1029_v48 = vpop.permute.xlu1 %1028 }
 0x131   : > { %v1035_v49 = vsel %vm1034_vm10, %v1029_v48, %v1031_v39  ;;  %v1057_v8 = vpop.permute.xlu0 %1056  ;;  %s2036_s6 = sadd.s32 (%p2704_p10), %s2347_s11, %s2327_s17 }
 0x132   : > { %1689 = vrot.lane.b32.xlu1 %v2490_v46, %s2594_s7  ;;  %1876 = vmatpush1.bf16.msra.mxu0 %v1035_v49  ;;  %v1058_v50 = vsel %vm1034_vm10, %v1055_v43, %v1057_v8  ;;  %vm1449_vm10 = vcmask 678912   ;;  %s2328_s12 = sshll.u32 (%p2704_p10), %s2036_s6, 3 }
 0x133   : > { %1687 = vrot.lane.b32.xlu0 %v2486_v29, %s2594_s7  ;;  %1961 = vmatprep.subr.bf16.mxu1 %v1058_v50  ;;  %s2038_s24 = scalar_lea.vmem (%p2704_p10), %s3056_s4, %s2328_s12 }
 0x134   : > { %v1086_v51 = vpop.permute.xlu1 %1085 }
 0x135   : > { %1096 = vst.msk [vmem:[#allocation2 + $0x1f0] sm:$0xff] %vm1087_vm12, %v1086_v51  ;;  %v1084_v52 = vpop.permute.xlu0 %1083 }
 0x136   : > { %1685 = vrot.lane.b32.xlu1 %v2307_v32, %s2594_s7  ;;  %v1089_v54 = vsel %vm1087_vm12, %v1084_v52, %v1086_v51  ;;  %v1762_v55 = vld [vmem:[#allocation2 + $0x1d0] sm:$0xff] }
 0x137   : > { %1657 = vrot.lane.b32.xlu0 %v2885_v56, %s2594_s7  ;;  %1962 = vmatpush1.bf16.msra.mxu1 %v1762_v55  ;;  %v2491_v56 = vld [vmem:[%s3054_s2] ss:$16 sps:$4 sm:$0xff]   ;;  %s3000_s7 = scalar_lea.vmem [#allocation5], %s2185_s27 }
 0x138   : > { %v1110_v9 = vpop.permute.xlu1 %1109  ;;  %1877 = vmatprep.subr.bf16.mxu0 %v1089_v54 }
 0x139   : > { %v1108_v59 = vpop.permute.xlu0 %1107 }
 0x13a   : > { %1821 = vperm.xlu1 %2448, %v1813_v57   ;;  %1115 = vst.msk [vmem:[#allocation2 + $0x1f0] sm:$0xff] %vm1114_vm13, %v1108_v59  ;;  %v1111_v60 = vsel %vm1087_vm12, %v1108_v59, %v1110_v9  ;;  %vm1502_vm13 = vcmask 670720  }
 0x13b   : > { %1963 = vmatprep.subr.bf16.mxu1 %v1111_v60  ;;  %1816 = vperm.xlu0 %2447, %v1812_v58  }
 0x13c   : > { %v1137_v61 = vpop.permute.xlu1 %1136 }
 0x13d   : > { %v1082_v62 = vpop.permute.xlu0 %1081 }
 0x13e   : > { %v1088_v63 = vsel %vm1087_vm12, %v1082_v62, %v1084_v52  ;;  %vm1484_vm12 = vcmask 1048216  }
 0x13f   : > { %1878 = vmatpush1.bf16.msra.mxu0 %v1088_v63 }
 0x140   : > { %v1161_v0 = vpop.permute.xlu1 %1160 }
 0x141   : > { %v1139_v1 = vpop.permute.xlu0 %1138  ;;  %v1766_v2 = vld [vmem:[#allocation2 + $0x1f0] sm:$0xff] }
 0x142   : > { %v1142_v4 = vsel %vm1140_vm14, %v1137_v61, %v1139_v1  ;;  %1149 = vst.msk [vmem:[#allocation2 + $0x210] sm:$0xff] %vm1140_vm14, %v1139_v1  ;;  %1964 = vmatpush1.bf16.msra.mxu1 %v1766_v2  ;;  %1880 = vmatmul.mubr.bf16.vlgmr.msra.gmra.mrb[0].mxu0 %v2491_v56 }
 0x143   : > { %1168 = vst.msk [vmem:[#allocation2 + $0x210] sm:$0xff] %vm1167_vm15, %v1161_v0  ;;  %1890 = vmatprep.subr.bf16.mxu0 %v1142_v4  ;;  %2324 = vmatprep.mubr.msk.bf16.mxu0 %vm1843_vm0, %v2494_v3  ;;  %vm1537_vm15 = vcmask 1048208  }
 0x144   : > { %v1135_v5 = vpop.permute.xlu1 %1134 }
 0x145   : > { %v1141_v6 = vsel %vm1140_vm14, %v1135_v5, %v1137_v61  ;;  %v1163_v7 = vpop.permute.xlu0 %1162  ;;  %1966 = vmatmul.mubr.bf16.vlgmr.msra.gmra.mrb[0].mxu1 %v2491_v56 }
 0x146   : > { %1891 = vmatpush1.bf16.msra.mxu0 %v1141_v6  ;;  %v1164_v10 = vsel %vm1140_vm14, %v1161_v0, %v1163_v7  ;;  %2325 = vmatprep.mubr.msk.bf16.mxu1 %vm1843_vm0, %v2494_v3  ;;  %vm1555_vm14 = vcmask 588800   ;;  %vm1590_vm0 = vcmask 1048128  }
 0x147   : > { %1976 = vmatprep.subr.bf16.mxu1 %v1164_v10 }
 0x148   : > { %v1192_v11 = vpop.permute.xlu1 %1191 }
 0x149   : > { %1202 = vst.msk [vmem:[#allocation2 + $0x230] sm:$0xff] %vm1193_vm1, %v1192_v11  ;;  %v1190_v12 = vpop.permute.xlu0 %1189 }
 0x14a   : > { %v1195_v13 = vsel %vm1193_vm1, %v1190_v12, %v1192_v11  ;;  %v1770_v14 = vld [vmem:[#allocation2 + $0x210] sm:$0xff] }
 0x14b   : > { %1977 = vmatpush1.bf16.msra.mxu1 %v1770_v14  ;;  %1892 = vmatprep.subr.bf16.mxu0 %v1195_v13 }
 0x14c   : > { %v1216_v15 = vpop.permute.xlu1 %1215 }
 0x14d   : > { %v1214_v16 = vpop.permute.xlu0 %1213 }
 0x14e   : > { %1221 = vst.msk [vmem:[#allocation2 + $0x230] sm:$0xff] %vm1220_vm2, %v1214_v16  ;;  %v1217_v17 = vsel %vm1193_vm1, %v1214_v16, %v1216_v15  ;;  %vm1661_vm2 = vcmask 572416  }
 0x14f   : > { %1978 = vmatprep.subr.bf16.mxu1 %v1217_v17 }
 0x150   : > { %v1236_v18 = vpop.permute.xlu1 %1235 }
 0x151   : > { %1243 = vst.msk [vmem:[#allocation2 + $0x248] sm:$0xff] %vm1237_vm3, %v1236_v18  ;;  %v1188_v19 = vpop.permute.xlu0 %1187 }
 0x152   : > { %v1194_v24 = vsel %vm1193_vm1, %v1188_v19, %v1190_v12  ;;  %vm1608_vm1 = vcmask 580608  }
 0x153   : > { %1893 = vmatpush1.bf16.msra.mxu0 %v1194_v24 }
 0x154   : > { %v1266_v20 = vpop.permute.xlu1 %1265 }
 0x155   : > { %v1264_v21 = vpop.permute.xlu0 %1263  ;;  %v1774_v22 = vld [vmem:[#allocation2 + $0x230] sm:$0xff] }
 0x156   : > { %v1268_v23 = vsel %vm1237_vm3, %v1264_v21, %v1266_v20  ;;  %1979 = vmatpush1.bf16.msra.mxu1 %v1774_v22 }
 0x157   : > { %1980 = vmatprep.subr.bf16.mxu1 %v1268_v23 }
 0x158   : > { %v1262_v27 = vpop.permute.xlu1 %1261 }
 0x159   : > { %v1267_v28 = vsel %vm1237_vm3, %v1262_v27, %v1264_v21  ;;  %1273 = vst.msk [vmem:[#allocation2 + $0x248] sm:$0xff] %vm1272_vm4, %v1262_v27  ;;  %v1234_v29 = vpop.permute.xlu0 %1233  ;;  %vm1696_vm4 = vcmask 1048112  }
 0x15a   : > { %v1238_v30 = vsel %vm1237_vm3, %v1234_v29, %v1236_v18  ;;  %1981 = vmatpush1.bf16.msra.mxu1 %v1267_v28  ;;  %vm1643_vm3 = vcmask 1048120  }
 0x15c   : > { %v1317_v31 = vpop.permute.xlu1 %1316 }
 0x15d   : > { %v1289_v32 = vpop.permute.xlu0 %1288 }
 0x15e   : > { %1296 = vst.msk [vmem:[#allocation2 + $0x268] sm:$0xff] %vm1290_vm5, %v1289_v32 }
 0x160   : > { %v1287_v26 = vpop.permute.xlu1 %1286  ;;  %v1777_v33 = vld [vmem:[#allocation2 + $0x248] sm:$0xff] }
 0x161   : > { %v1291_v34 = vsel %vm1290_vm5, %v1287_v26, %v1289_v32  ;;  %1894 = vmatprep.subr.bf16.mxu0 %v1777_v33  ;;  %v1319_v25 = vpop.permute.xlu0 %1318 }
 0x162   : > { %1895 = vmatpush1.bf16.msra.mxu0 %v1238_v30  ;;  %v1321_v35 = vsel %vm1290_vm5, %v1317_v31, %v1319_v25  ;;  %v2496_v25 = vld [vmem:[%s3054_s2 + $0x8] ss:$16 sps:$4 sm:$0xff]  }
 0x163   : > { %1982 = vmatprep.subr.bf16.mxu1 %v1321_v35 }
 0x164   : > { %v1342_v36 = vpop.permute.xlu1 %1341 }
 0x165   : > { %1349 = vst.msk [vmem:[#allocation2 + $0x288] sm:$0xff] %vm1343_vm6, %v1342_v36  ;;  %v1315_v37 = vpop.permute.xlu0 %1314 }
 0x166   : > { %v1320_v38 = vsel %vm1290_vm5, %v1315_v37, %v1317_v31  ;;  %1326 = vst.msk [vmem:[#allocation2 + $0x268] sm:$0xff] %vm1325_vm7, %v1315_v37 }
 0x167   : > { %1983 = vmatpush1.bf16.msra.mxu1 %v1320_v38 }
 0x168   : > { %v1372_v39 = vpop.permute.xlu1 %1371 }
 0x169   : > { %v1370_v40 = vpop.permute.xlu0 %1369 }
 0x16a   : > { %v1374_v41 = vsel %vm1343_vm6, %v1370_v40, %v1372_v39 }
 0x16b   : > { %1984 = vmatprep.subr.bf16.mxu1 %v1374_v41 }
 0x16c   : > { %v1368_v42 = vpop.permute.xlu1 %1367 }
 0x16d   : > { %v1373_v43 = vsel %vm1343_vm6, %v1368_v42, %v1370_v40  ;;  %1379 = vst.msk [vmem:[#allocation2 + $0x288] sm:$0xff] %vm1378_vm8, %v1368_v42  ;;  %v1340_v44 = vpop.permute.xlu0 %1339  ;;  %v1781_v45 = vld [vmem:[#allocation2 + $0x268] sm:$0xff] }
 0x16e   : > { %1985 = vmatpush1.bf16.msra.mxu1 %v1373_v43  ;;  %v1344_v46 = vsel %vm1343_vm6, %v1340_v44, %v1342_v36  ;;  %1896 = vmatprep.subr.bf16.mxu0 %v1781_v45 }
 0x16f   : > { %1897 = vmatpush1.bf16.msra.mxu0 %v1291_v34 }
 0x170   : > { %v1423_v47 = vpop.permute.xlu1 %1422 }
 0x171   : > { %v1395_v48 = vpop.permute.xlu0 %1394 }
 0x172   : > { %1402 = vst.msk [vmem:[#allocation2 + $0x2a8] sm:$0xff] %vm1396_vm9, %v1395_v48 }
 0x174   : > { %v1393_v49 = vpop.permute.xlu1 %1392  ;;  %v1785_v8 = vld [vmem:[#allocation2 + $0x288] sm:$0xff] }
 0x175   : > { %v1397_v50 = vsel %vm1396_vm9, %v1393_v49, %v1395_v48  ;;  %1898 = vmatprep.subr.bf16.mxu0 %v1785_v8  ;;  %v1425_v51 = vpop.permute.xlu0 %1424 }
 0x176   : > { %1899 = vmatpush1.bf16.msra.mxu0 %v1344_v46  ;;  %v1427_v52 = vsel %vm1396_vm9, %v1423_v47, %v1425_v51 }
 0x177   : > { %1986 = vmatprep.subr.bf16.mxu1 %v1427_v52 }
 0x178   : > { %v1448_v53 = vpop.permute.xlu1 %1447 }
 0x179   : > { %1455 = vst.msk [vmem:[#allocation2 + $0x2c8] sm:$0xff] %vm1449_vm10, %v1448_v53  ;;  %v1421_v54 = vpop.permute.xlu0 %1420 }
 0x17a   : > { %v1426_v55 = vsel %vm1396_vm9, %v1421_v54, %v1423_v47  ;;  %1432 = vst.msk [vmem:[#allocation2 + $0x2a8] sm:$0xff] %vm1431_vm11, %v1421_v54 }
 0x17b   : > { %1987 = vmatpush1.bf16.msra.mxu1 %v1426_v55 }
 0x17c   : > { %v1478_v57 = vpop.permute.xlu1 %1477 }
 0x17d   : > { %v1476_v9 = vpop.permute.xlu0 %1475 }
 0x17e   : > { %v1480_v58 = vsel %vm1449_vm10, %v1476_v9, %v1478_v57 }
 0x17f   : > { %1988 = vmatprep.subr.bf16.mxu1 %v1480_v58 }
 0x180   : > { %v1474_v59 = vpop.permute.xlu1 %1473 }
 0x181   : > { %v1479_v60 = vsel %vm1449_vm10, %v1474_v59, %v1476_v9  ;;  %1485 = vst.msk [vmem:[#allocation2 + $0x2c8] sm:$0xff] %vm1484_vm12, %v1474_v59  ;;  %v1446_v61 = vpop.permute.xlu0 %1445  ;;  %v1789_v62 = vld [vmem:[#allocation2 + $0x2a8] sm:$0xff] }
 0x182   : > { %1989 = vmatpush1.bf16.msra.mxu1 %v1479_v60  ;;  %v1450_v63 = vsel %vm1449_vm10, %v1446_v61, %v1448_v53  ;;  %1900 = vmatprep.subr.bf16.mxu0 %v1789_v62 }
 0x183   : > { %1901 = vmatpush1.bf16.msra.mxu0 %v1397_v50 }
 0x184   : > { %v1529_v56 = vpop.permute.xlu1 %1528 }
 0x185   : > { %v1501_v0 = vpop.permute.xlu0 %1500 }
 0x186   : > { %1508 = vst.msk [vmem:[#allocation2 + $0x2e8] sm:$0xff] %vm1502_vm13, %v1501_v0 }
 0x188   : > { %v1499_v1 = vpop.permute.xlu1 %1498  ;;  %v1793_v2 = vld [vmem:[#allocation2 + $0x2c8] sm:$0xff] }
 0x189   : > { %v1503_v3 = vsel %vm1502_vm13, %v1499_v1, %v1501_v0  ;;  %1902 = vmatprep.subr.bf16.mxu0 %v1793_v2  ;;  %v1531_v4 = vpop.permute.xlu0 %1530 }
 0x18a   : > { %1903 = vmatpush1.bf16.msra.mxu0 %v1450_v63  ;;  %v1533_v5 = vsel %vm1502_vm13, %v1529_v56, %v1531_v4 }
 0x18b   : > { %1990 = vmatprep.subr.bf16.mxu1 %v1533_v5 }
 0x18c   : > { %v1554_v6 = vpop.permute.xlu1 %1553 }
 0x18d   : > { %1561 = vst.msk [vmem:[#allocation2 + $0x308] sm:$0xff] %vm1555_vm14, %v1554_v6  ;;  %v1527_v7 = vpop.permute.xlu0 %1526 }
 0x18e   : > { %v1532_v10 = vsel %vm1502_vm13, %v1527_v7, %v1529_v56  ;;  %1538 = vst.msk [vmem:[#allocation2 + $0x2e8] sm:$0xff] %vm1537_vm15, %v1527_v7 }
 0x18f   : > { %1991 = vmatpush1.bf16.msra.mxu1 %v1532_v10 }
 0x190   : > { %v1584_v11 = vpop.permute.xlu1 %1583 }
 0x191   : > { %v1582_v12 = vpop.permute.xlu0 %1581 }
 0x192   : > { %v1586_v13 = vsel %vm1555_vm14, %v1582_v12, %v1584_v11 }
 0x193   : > { %1992 = vmatprep.subr.bf16.mxu1 %v1586_v13 }
 0x194   : > { %v1580_v14 = vpop.permute.xlu1 %1579 }
 0x195   : > { %v1585_v15 = vsel %vm1555_vm14, %v1580_v14, %v1582_v12  ;;  %1591 = vst.msk [vmem:[#allocation2 + $0x308] sm:$0xff] %vm1590_vm0, %v1580_v14  ;;  %v1552_v16 = vpop.permute.xlu0 %1551  ;;  %v1797_v17 = vld [vmem:[#allocation2 + $0x2e8] sm:$0xff] }
 0x196   : > { %1993 = vmatpush1.bf16.msra.mxu1 %v1585_v15  ;;  %v1556_v18 = vsel %vm1555_vm14, %v1552_v16, %v1554_v6  ;;  %1904 = vmatprep.subr.bf16.mxu0 %v1797_v17 }
 0x197   : > { %1905 = vmatpush1.bf16.msra.mxu0 %v1503_v3 }
 0x198   : > { %v1635_v19 = vpop.permute.xlu1 %1634 }
 0x199   : > { %v1607_v24 = vpop.permute.xlu0 %1606 }
 0x19a   : > { %1614 = vst.msk [vmem:[#allocation2 + $0x328] sm:$0xff] %vm1608_vm1, %v1607_v24 }
 0x19c   : > { %v1605_v20 = vpop.permute.xlu1 %1604  ;;  %v1801_v21 = vld [vmem:[#allocation2 + $0x308] sm:$0xff] }
 0x19d   : > { %v1609_v22 = vsel %vm1608_vm1, %v1605_v20, %v1607_v24  ;;  %1906 = vmatprep.subr.bf16.mxu0 %v1801_v21  ;;  %v1637_v23 = vpop.permute.xlu0 %1636 }
 0x19e   : > { %1907 = vmatpush1.bf16.msra.mxu0 %v1556_v18  ;;  %v1639_v27 = vsel %vm1608_vm1, %v1635_v19, %v1637_v23 }
 0x19f   : > { %1994 = vmatprep.subr.bf16.mxu1 %v1639_v27 }
 0x1a0   : > { %v1660_v28 = vpop.permute.xlu1 %1659 }
 0x1a1   : > { %1667 = vst.msk [vmem:[#allocation2 + $0x348] sm:$0xff] %vm1661_vm2, %v1660_v28  ;;  %v1633_v29 = vpop.permute.xlu0 %1632 }
 0x1a2   : > { %v1638_v30 = vsel %vm1608_vm1, %v1633_v29, %v1635_v19  ;;  %1644 = vst.msk [vmem:[#allocation2 + $0x328] sm:$0xff] %vm1643_vm3, %v1633_v29 }
 0x1a3   : > { %1995 = vmatpush1.bf16.msra.mxu1 %v1638_v30 }
 0x1a4   : > { %v1690_v31 = vpop.permute.xlu1 %1689 }
 0x1a5   : > { %v1688_v32 = vpop.permute.xlu0 %1687 }
 0x1a6   : > { %v1692_v26 = vsel %vm1661_vm2, %v1688_v32, %v1690_v31 }
 0x1a7   : > { %1996 = vmatprep.subr.bf16.mxu1 %v1692_v26 }
 0x1a8   : > { %v1686_v33 = vpop.permute.xlu1 %1685 }
 0x1a9   : > { %v1691_v34 = vsel %vm1661_vm2, %v1686_v33, %v1688_v32  ;;  %1697 = vst.msk [vmem:[#allocation2 + $0x348] sm:$0xff] %vm1696_vm4, %v1686_v33  ;;  %v1658_v35 = vpop.permute.xlu0 %1657  ;;  %v1805_v36 = vld [vmem:[#allocation2 + $0x328] sm:$0xff] }
 0x1aa   : > { %1997 = vmatpush1.bf16.msra.mxu1 %v1691_v34  ;;  %v1662_v37 = vsel %vm1661_vm2, %v1658_v35, %v1660_v28  ;;  %1908 = vmatprep.subr.bf16.mxu0 %v1805_v36 }
 0x1ab   : > { %1909 = vmatpush1.bf16.msra.mxu0 %v1609_v22 }
 0x1ad   : > { %2009 = vmatmul.mubr.bf16.vlgmr.msra.gmra.mrb[0].mxu1 %v2496_v25 }
 0x1b0   : > { %v1809_v38 = vld [vmem:[#allocation2 + $0x348] sm:$0xff] }
 0x1b1   : > { %1910 = vmatprep.subr.bf16.mxu0 %v1809_v38 }
 0x1b2   : > { %1911 = vmatpush1.bf16.msra.mxu0 %v1662_v37 }
 0x1b5   : > { %1923 = vmatmul.mubr.bf16.vlgmr.msra.gmra.mrb[0].mxu0 %v2496_v25 }
 0x1b9   : > { %v1822_v41 = vpop.permute.xlu1 %1821 }
 0x1ba   : > { %v1817_v39 = vpop.permute.xlu0 %1816 }
 0x280   : > { %v2010_v40 = vpop.f32.mrb[0].mxu1 }
 0x281   : > { %v2335_v42 = vadd.f32 %v2010_v40, %v1817_v39  ;;  %v2012_v43 = vpop.f32.mrb[1].mxu1 }
 0x282   : > { %v2336_v44 = vadd.f32 %v2012_v43, %v1817_v39  ;;  %v2014_v45 = vpop.f32.mrb[2].mxu1 }
 0x283   : > { %2021 = vst [vmem:[%s3000_s7 + $0x10] sm:$0xff] %v2335_v42  ;;  %v2337_v46 = vadd.f32 %v2014_v45, %v1822_v41  ;;  %v2016_v47 = vpop.f32.mrb[3].mxu1 }
 0x284   : > { %2022 = vst [vmem:[%s3000_s7 + $0x18] sm:$0xff] %v2336_v44  ;;  %v2338_v48 = vadd.f32 %v2016_v47, %v1822_v41 }
 0x285   : > { %2025 = vst [vmem:[%s3000_s7 + $0x30] sm:$0xff] %v2337_v46 }
 0x286   : > { %2026 = vst [vmem:[%s3000_s7 + $0x38] sm:$0xff] %v2338_v48 }
 0x288   : > { %v1924_v49 = vpop.f32.mrb[0].mxu0  ;;  %2033 = sbr.rel (!%p2704_p10) target bundleno = 663 (0x297), region = 86 }
 0x289   : > { %v2331_v8 = vadd.f32 %v1924_v49, %v1817_v39  ;;  %v1926_v50 = vpop.f32.mrb[1].mxu0 }
 0x28a   : > { %v2332_v51 = vadd.f32 %v1926_v50, %v1817_v39  ;;  %v1928_v52 = vpop.f32.mrb[2].mxu0  ;;  %v2055_v58 = vld [vmem:[%s3000_s7 + $0x10] sm:$0xff] (%p2704_p10) }
 0x28b   : > { %2019 = vst [vmem:[%s3000_s7] sm:$0xff] %v2331_v8  ;;  %v2333_v53 = vadd.f32 %v1928_v52, %v1822_v41  ;;  %v1930_v54 = vpop.f32.mrb[3].mxu0  ;;  %v2057_v59 = vld [vmem:[%s3000_s7 + $0x18] sm:$0xff] (%p2704_p10)  ;;  %2056 = vst [vmem:[%s2038_s24 + $0x10] sm:$0xff] (%p2704_p10), %v2055_v58 }
 0x28c   : > { %2020 = vst [vmem:[%s3000_s7 + $0x8] sm:$0xff] %v2332_v51  ;;  %v2334_v55 = vadd.f32 %v1930_v54, %v1822_v41  ;;  %v2063_v62 = vld [vmem:[%s3000_s7 + $0x30] sm:$0xff] (%p2704_p10)  ;;  %2058 = vst [vmem:[%s2038_s24 + $0x18] sm:$0xff] (%p2704_p10), %v2057_v59 }
 0x28d   : > { %2023 = vst [vmem:[%s3000_s7 + $0x20] sm:$0xff] %v2333_v53  ;;  %v2065_v63 = vld [vmem:[%s3000_s7 + $0x38] sm:$0xff] (%p2704_p10)  ;;  %2064 = vst [vmem:[%s2038_s24 + $0x70] sm:$0xff] (%p2704_p10), %v2063_v62 }
 0x28e   : > { %2024 = vst [vmem:[%s3000_s7 + $0x28] sm:$0xff] %v2334_v55  ;;  %2066 = vst [vmem:[%s2038_s24 + $0x78] sm:$0xff] (%p2704_p10), %v2065_v63 }
 0x292   : > { %v2051_v57 = vld [vmem:[%s3000_s7] sm:$0xff] }
 0x293   : > { %v2053_v9 = vld [vmem:[%s3000_s7 + $0x8] sm:$0xff]  ;;  %2052 = vst [vmem:[%s2038_s24] sm:$0xff] %v2051_v57 }
 0x294   : > { %v2059_v60 = vld [vmem:[%s3000_s7 + $0x20] sm:$0xff]  ;;  %2054 = vst [vmem:[%s2038_s24 + $0x8] sm:$0xff] %v2053_v9 }
 0x295   : > { %v2061_v61 = vld [vmem:[%s3000_s7 + $0x28] sm:$0xff]  ;;  %2060 = vst [vmem:[%s2038_s24 + $0x60] sm:$0xff] %v2059_v60 }
 0x296   : > { %2062 = vst [vmem:[%s2038_s24 + $0x68] sm:$0xff] %v2061_v61 }
 0x297 PF: > { %s14_s23 = sadd.s32 1, %s2567_s23   ;;  %s3060_s15 = smov %s2539_s16 }
 0x298   : > { %p11_p1 = scmp.ge.s32.totalorder %s14_s23, 8   ;;  %s3061_s16 = smov %s2712_s14 }
 0x299   : > { %s3062_s17 = smov %s2547_s18  ;;  %s3063_s18 = smov %s2709_s13 }
 0x29a   : > { %s3064_s19 = smov %s2559_s21  ;;  %s3065_s20 = smov %s2563_s22 }
 0x29b   : > { %s3066_s21 = smov %s2672_s28  ;;  %s3067_s22 = smov %s3071_s26 }
 0x29c   :  { %13 = sbr.rel (!%p11_p1) target bundleno = 5 (0x5), region = 148 }

</bundles_post_ra>
